<compile_context>
chip_gen: v5e
topology: v5e:2x2
jax: 0.10.0
libtpu: 0.0.40
codegen_flags: <defaults>
</compile_context>

<pallas_src>
import functools

import jax
import jax.numpy as jnp
from jax import lax
from jax.experimental import pallas as pl
from jax.experimental.pallas import tpu as pltpu

# NOTE: set to jnp.bfloat16 on v6e/v7x for MXU-peak matmuls (keep f32 accum);
# kept float32 here so the kernel matches the PyTorch reference numerics.
MATMUL_DTYPE = jnp.float32


# ----------------------------------------------------------------------------
# Fused decoder-stack kernel
# ----------------------------------------------------------------------------
def _decoder_stack_kernel(
        x_in_ref, enc_ref, tmask_ref, smask_ref,
        sa_wq_ref, sa_wk_ref, sa_wv_ref, sa_wo_ref, sa_bo_ref, ln0_g_ref, ln0_b_ref,
        ca_wq_ref, ca_wk_ref, ca_wv_ref, ca_wo_ref, ca_bo_ref, ln1_g_ref, ln1_b_ref,
        w1_ref, b1_ref, w2_ref, b2_ref, ln2_g_ref, ln2_b_ref,
        wout_ref, bout_ref,
        out_ref, x_vmem,
        *, heads, head_dim, eps):
    """One grid step == one DecoderBlock; activations persist in x_vmem.

    x_in_ref : (M, E)   embedded target tokens (M = B*Lt), resident
    enc_ref  : (Mk, E)  encoder output (Mk = B*Ls), resident
    tmask_ref: (M, M)   block-diag batch mask for self-attn (1 keep, 0 masked,
                        -1 cross-batch)
    smask_ref: (M, Mk)  same for cross-attn
    per-layer weight refs carry a leading (1,) layer dim (indexed by the grid)
    wout_ref : (E, Vp)  lane-padded, pre-transposed fc_out weight
    out_ref  : (M, Vp)  logits, written on the last layer only
    """
    layer = pl.program_id(0)

    @pl.when(layer == 0)
    def _():
        x_vmem[...] = x_in_ref[...]

    x = x_vmem[...]          # (M, E) activation carried across layers
    enc = enc_ref[...]       # (Mk, E)

    trans_b = (((1,), (1,)), ((), ()))   # A @ B.T without materializing B.T

    def attention(xq, xkv, mask, wq, wk, wv, wo, bo):
        # Fused per-head projections: wq/wk/wv are block-diagonal (E,E),
        # pre-transposed, and wq already carries the 1/sqrt(embed) scale.
        q = jnp.dot(xq, wq, preferred_element_type=jnp.float32)
        k = jnp.dot(xkv, wk, preferred_element_type=jnp.float32)
        v = jnp.dot(xkv, wv, preferred_element_type=jnp.float32)

        keep = mask > 0.5
        # Within-batch masked positions -> -1e20 (reference's masked_fill);
        # cross-batch positions (mask == -1) -> -inf so they contribute exactly
        # zero probability even when a row is fully masked within its batch.
        fill = jnp.where(mask < -0.5, jnp.float32(-jnp.inf), jnp.float32(-1e20))

        outs = []
        for h in range(heads):                       # static, heads is small;
            sl = slice(h * head_dim, (h + 1) * head_dim)
            e = lax.dot_general(q[:, sl], k[:, sl], trans_b,
                                preferred_element_type=jnp.float32)   # (M, Mk)
            e = jnp.where(keep, e, fill)
            m = jnp.max(e, axis=-1, keepdims=True)
            p = jnp.exp(e - m)
            denom = jnp.sum(p, axis=-1, keepdims=True)
            a = p * pl.reciprocal(denom, approx=True)
            outs.append(jnp.dot(a, v[:, sl], preferred_element_type=jnp.float32))
        o = jnp.concatenate(outs, axis=-1)           # (M, E)
        return jnp.dot(o, wo, preferred_element_type=jnp.float32) + bo

    def add_layernorm(a, b, g, beta):
        y = a + b
        mu = jnp.mean(y, axis=-1, keepdims=True)
        var = jnp.mean((y - mu) ** 2, axis=-1, keepdims=True)
        return (y - mu) * lax.rsqrt(var + eps) * g + beta

    # --- DecoderBlock: masked self-attention + add&norm (dropout == identity)
    sa = attention(x, x, tmask_ref[...],
                   sa_wq_ref[0], sa_wk_ref[0], sa_wv_ref[0], sa_wo_ref[0], sa_bo_ref[0])
    qx = add_layernorm(sa, x, ln0_g_ref[0], ln0_b_ref[0])

    # --- TransformerBlock: cross-attention + add&norm + FFN + add&norm -------
    ca = attention(qx, enc, smask_ref[...],
                   ca_wq_ref[0], ca_wk_ref[0], ca_wv_ref[0], ca_wo_ref[0], ca_bo_ref[0])
    y = add_layernorm(ca, qx, ln1_g_ref[0], ln1_b_ref[0])

    h1 = jnp.dot(y, w1_ref[0], preferred_element_type=jnp.float32) + b1_ref[0]
    h1 = jnp.maximum(h1, 0.0)                                         # ReLU
    ff = jnp.dot(h1, w2_ref[0], preferred_element_type=jnp.float32) + b2_ref[0]
    x_new = add_layernorm(ff, y, ln2_g_ref[0], ln2_b_ref[0])

    x_vmem[...] = x_new

    # --- final lane-dense vocabulary projection on the last layer ------------
    @pl.when(layer == pl.num_programs(0) - 1)
    def _():
        out_ref[...] = (jnp.dot(x_new, wout_ref[...],
                                preferred_element_type=jnp.float32) + bout_ref[...])


# ----------------------------------------------------------------------------
# Wrapper-side weight / mask preparation (runs once in XLA, outside the kernel)
# ----------------------------------------------------------------------------
def _block_diag_head_weight(w, heads):
    """(hd,hd) PyTorch Linear weight shared by all heads -> (E,E) operand for
    a single `x @ W` projection (block-diagonal, pre-transposed)."""
    return jnp.kron(jnp.eye(heads, dtype=w.dtype), w.T)


def _batch_block_mask(mask):
    """(B, Lq, Lk) 0/1 mask -> (B*Lq, B*Lk) with the per-batch mask on the
    block diagonal and -1 marking cross-batch positions."""
    B, Lq, Lk = mask.shape
    eye = jnp.eye(B, dtype=mask.dtype)
    big = (mask[:, :, None, :] * eye[:, None, :, None]
           - (1.0 - eye)[:, None, :, None])
    return big.reshape(B * Lq, B * Lk)


def decoder_forward(params, trg, enc_out, src_mask, trg_mask, heads):
    """Pallas implementation of Decoder.forward(x, enc_out, src_mask, trg_mask)."""
    B, Lt = trg.shape
    _, Ls, E = enc_out.shape
    hd = E // heads
    layers = params['layers']
    num_layers = len(layers)
    Hf = layers[0]['w1'].shape[0]
    V = params['fc_w'].shape[0]
    Vp = ((V + 127) // 128) * 128            # lane-dense padded vocab width
    M, Mk = B * Lt, B * Ls
    scale = 1.0 / (E ** 0.5)

    # ---- embeddings (gather -> XLA glue) and block-diag batch masks ---------
    pos = jnp.arange(Lt)
    x = (jnp.take(params['word_emb'], trg, axis=0)
         + jnp.take(params['pos_emb'], pos, axis=0)[None])
    x2 = x.reshape(M, E).astype(jnp.float32)
    enc2 = enc_out.reshape(Mk, E).astype(jnp.float32)
    tmask = _batch_block_mask(trg_mask.astype(jnp.float32))
    smask = _batch_block_mask(src_mask.astype(jnp.float32))

    # ---- one-time weight prep: block-diag projections, pre-transposed mats --
    def stack(fn):
        return jnp.stack([fn(lp) for lp in layers])

    sa_wq = stack(lambda lp: _block_diag_head_weight(lp['sa']['wq'], heads) * scale)
    sa_wk = stack(lambda lp: _block_diag_head_weight(lp['sa']['wk'], heads))
    sa_wv = stack(lambda lp: _block_diag_head_weight(lp['sa']['wv'], heads))
    sa_wo = stack(lambda lp: lp['sa']['wo'].T)
    sa_bo = stack(lambda lp: lp['sa']['bo'][None, :])
    ln0_g = stack(lambda lp: lp['ln0_g'][None, :])
    ln0_b = stack(lambda lp: lp['ln0_b'][None, :])
    ca_wq = stack(lambda lp: _block_diag_head_weight(lp['ca']['wq'], heads) * scale)
    ca_wk = stack(lambda lp: _block_diag_head_weight(lp['ca']['wk'], heads))
    ca_wv = stack(lambda lp: _block_diag_head_weight(lp['ca']['wv'], heads))
    ca_wo = stack(lambda lp: lp['ca']['wo'].T)
    ca_bo = stack(lambda lp: lp['ca']['bo'][None, :])
    ln1_g = stack(lambda lp: lp['ln1_g'][None, :])
    ln1_b = stack(lambda lp: lp['ln1_b'][None, :])
    w1 = stack(lambda lp: lp['w1'].T)                       # (L, E, Hf)
    b1 = stack(lambda lp: lp['b1'][None, :])                # (L, 1, Hf)
    w2 = stack(lambda lp: lp['w2'].T)                       # (L, Hf, E)
    b2 = stack(lambda lp: lp['b2'][None, :])
    ln2_g = stack(lambda lp: lp['ln2_g'][None, :])
    ln2_b = stack(lambda lp: lp['ln2_b'][None, :])
    wout = jnp.zeros((E, Vp), jnp.float32).at[:, :V].set(params['fc_w'].T)
    bout = jnp.zeros((1, Vp), jnp.float32).at[:, :V].set(params['fc_b'][None, :])

    kernel = functools.partial(_decoder_stack_kernel,
                               heads=heads, head_dim=hd, eps=1e-5)

    c2 = lambda l: (0, 0)          # resident across all layers
    p3 = lambda l: (l, 0, 0)       # indexed by the layer grid axis
    W = lambda shp: pl.BlockSpec((1,) + shp, p3)

    out = pl.pallas_call(
        kernel,
        out_shape=jax.ShapeDtypeStruct((M, Vp), jnp.float32),
        grid=(num_layers,),
        in_specs=[
            pl.BlockSpec((M, E), c2),       # x (embedded trg)
            pl.BlockSpec((Mk, E), c2),      # enc_out
            pl.BlockSpec((M, M), c2),       # trg mask (block-diag over batch)
            pl.BlockSpec((M, Mk), c2),      # src mask (block-diag over batch)
            W((E, E)), W((E, E)), W((E, E)), W((E, E)), W((1, E)),   # self-attn
            W((1, E)), W((1, E)),                                     # norm
            W((E, E)), W((E, E)), W((E, E)), W((E, E)), W((1, E)),   # cross-attn
            W((1, E)), W((1, E)),                                     # norm1
            W((E, Hf)), W((1, Hf)), W((Hf, E)), W((1, E)),            # FFN
            W((1, E)), W((1, E)),                                     # norm2
            pl.BlockSpec((E, Vp), c2),      # fc_out weight (padded, transposed)
            pl.BlockSpec((1, Vp), c2),      # fc_out bias (padded)
        ],
        out_specs=pl.BlockSpec((M, Vp), c2),
        scratch_shapes=[pltpu.VMEM((M, E), jnp.float32)],
        compiler_params=pltpu.CompilerParams(
            dimension_semantics=("arbitrary",)),   # layer axis carries state
    )(x2, enc2, tmask, smask,
      sa_wq, sa_wk, sa_wv, sa_wo, sa_bo, ln0_g, ln0_b,
      ca_wq, ca_wk, ca_wv, ca_wo, ca_bo, ln1_g, ln1_b,
      w1, b1, w2, b2, ln2_g, ln2_b,
      wout, bout)

    return out[:, :V].reshape(B, Lt, V)


# ----------------------------------------------------------------------------
# Parameter initialization (deterministic, mirrors the PyTorch module shapes)
# ----------------------------------------------------------------------------
def init_params(key, trg_vocab, embed, num_layers, heads, fe, max_len):
    hd = embed // heads
    hf = fe * embed
    keys = iter(jax.random.split(key, 256))

    def w(shape, scale=0.1):
        return (scale * jax.random.normal(next(keys), shape)).astype(jnp.float32)

    def attn_p():
        return dict(wq=w((hd, hd)), wk=w((hd, hd)), wv=w((hd, hd)),
                    wo=w((embed, embed)),
                    bo=jnp.zeros((embed,), jnp.float32))

    def layer_p():
        return dict(sa=attn_p(),
                    ln0_g=jnp.ones((embed,), jnp.float32),
                    ln0_b=jnp.zeros((embed,), jnp.float32),
                    ca=attn_p(),
                    ln1_g=jnp.ones((embed,), jnp.float32),
                    ln1_b=jnp.zeros((embed,), jnp.float32),
                    w1=w((hf, embed)), b1=jnp.zeros((hf,), jnp.float32),
                    w2=w((embed, hf)), b2=jnp.zeros((embed,), jnp.float32),
                    ln2_g=jnp.ones((embed,), jnp.float32),
                    ln2_b=jnp.zeros((embed,), jnp.float32))

    return dict(word_emb=w((trg_vocab, embed), 0.5),
                pos_emb=w((max_len, embed), 0.5),
                layers=[layer_p() for _ in range(num_layers)],
                fc_w=w((trg_vocab, embed)),
                fc_b=jnp.zeros((trg_vocab,), jnp.float32))


# ----------------------------------------------------------------------------
if __name__ == "__main__":
    key = jax.random.PRNGKey(0)
    trg_vocab = 48
    embed, num_layers, heads, fe, max_len = 32, 2, 4, 2, 16
    B, Lt, Ls = 2, 8, 8

    k_param, k_trg, k_enc = jax.random.split(key, 3)
    params = init_params(k_param, trg_vocab, embed, num_layers, heads, fe, max_len)

    trg = jax.random.randint(k_trg, (B, Lt), 0, trg_vocab)
    enc_out = jax.random.normal(k_enc, (B, Ls, embed), dtype=jnp.float32)

    # Masks as the PyTorch driver would build them: causal target mask and a
    # source padding mask (last 2 source positions treated as padding).
    trg_mask = jnp.broadcast_to(
        jnp.tril(jnp.ones((Lt, Lt), jnp.float32))[None], (B, Lt, Lt))
    src_valid = jnp.ones((B, Ls), jnp.float32).at[:, -2:].set(0.0)
    src_mask = jnp.broadcast_to(src_valid[:, None, :], (B, Lt, Ls))

    fwd = jax.jit(functools.partial(decoder_forward, heads=heads))
    out = fwd(params, trg, enc_out, src_mask, trg_mask)
    out = jax.block_until_ready(out)

    assert out.shape == (B, Lt, trg_vocab)
    assert bool(jnp.all(jnp.isfinite(out)))
    print("KERNEL_OK")
</pallas_src>

<mosaic_0001>
module attributes {stable_mosaic.version = 11 : i64} {
  func.func @_decoder_stack_kernel(%arg0: i32, %arg1: memref<16x32xf32, #tpu.memory_space<vmem>>, %arg2: memref<16x32xf32, #tpu.memory_space<vmem>>, %arg3: memref<16x16xf32, #tpu.memory_space<vmem>>, %arg4: memref<16x16xf32, #tpu.memory_space<vmem>>, %arg5: memref<1x32x32xf32, #tpu.memory_space<vmem>>, %arg6: memref<1x32x32xf32, #tpu.memory_space<vmem>>, %arg7: memref<1x32x32xf32, #tpu.memory_space<vmem>>, %arg8: memref<1x32x32xf32, #tpu.memory_space<vmem>>, %arg9: memref<1x1x32xf32, #tpu.memory_space<vmem>>, %arg10: memref<1x1x32xf32, #tpu.memory_space<vmem>>, %arg11: memref<1x1x32xf32, #tpu.memory_space<vmem>>, %arg12: memref<1x32x32xf32, #tpu.memory_space<vmem>>, %arg13: memref<1x32x32xf32, #tpu.memory_space<vmem>>, %arg14: memref<1x32x32xf32, #tpu.memory_space<vmem>>, %arg15: memref<1x32x32xf32, #tpu.memory_space<vmem>>, %arg16: memref<1x1x32xf32, #tpu.memory_space<vmem>>, %arg17: memref<1x1x32xf32, #tpu.memory_space<vmem>>, %arg18: memref<1x1x32xf32, #tpu.memory_space<vmem>>, %arg19: memref<1x32x64xf32, #tpu.memory_space<vmem>>, %arg20: memref<1x1x64xf32, #tpu.memory_space<vmem>>, %arg21: memref<1x64x32xf32, #tpu.memory_space<vmem>>, %arg22: memref<1x1x32xf32, #tpu.memory_space<vmem>>, %arg23: memref<1x1x32xf32, #tpu.memory_space<vmem>>, %arg24: memref<1x1x32xf32, #tpu.memory_space<vmem>>, %arg25: memref<32x128xf32, #tpu.memory_space<vmem>>, %arg26: memref<1x128xf32, #tpu.memory_space<vmem>>, %arg27: memref<16x128xf32, #tpu.memory_space<vmem>>, %arg28: memref<16x32xf32, #tpu.memory_space<vmem>>) attributes {dimension_semantics = [#tpu.dimension_semantics<arbitrary>], iteration_bounds = array<i64: 2>, scalar_prefetch = 0 : i64, scratch_operands = 1 : i64, tpu.core_type = #tpu.core_type<tc>, window_params = [{pipeline_mode = #tpu.pipeline_mode<synchronous>, transform_indices = @transform_0, window_bounds = array<i64: 16, 32>}, {pipeline_mode = #tpu.pipeline_mode<synchronous>, transform_indices = @transform_1, window_bounds = array<i64: 16, 32>}, {pipeline_mode = #tpu.pipeline_mode<synchronous>, transform_indices = @transform_2, window_bounds = array<i64: 16, 16>}, {pipeline_mode = #tpu.pipeline_mode<synchronous>, transform_indices = @transform_3, window_bounds = array<i64: 16, 16>}, {transform_indices = @transform_4, window_bounds = array<i64: 1, 32, 32>}, {transform_indices = @transform_5, window_bounds = array<i64: 1, 32, 32>}, {transform_indices = @transform_6, window_bounds = array<i64: 1, 32, 32>}, {transform_indices = @transform_7, window_bounds = array<i64: 1, 32, 32>}, {transform_indices = @transform_8, window_bounds = array<i64: 1, 1, 32>}, {transform_indices = @transform_9, window_bounds = array<i64: 1, 1, 32>}, {transform_indices = @transform_10, window_bounds = array<i64: 1, 1, 32>}, {transform_indices = @transform_11, window_bounds = array<i64: 1, 32, 32>}, {transform_indices = @transform_12, window_bounds = array<i64: 1, 32, 32>}, {transform_indices = @transform_13, window_bounds = array<i64: 1, 32, 32>}, {transform_indices = @transform_14, window_bounds = array<i64: 1, 32, 32>}, {transform_indices = @transform_15, window_bounds = array<i64: 1, 1, 32>}, {transform_indices = @transform_16, window_bounds = array<i64: 1, 1, 32>}, {transform_indices = @transform_17, window_bounds = array<i64: 1, 1, 32>}, {transform_indices = @transform_18, window_bounds = array<i64: 1, 32, 64>}, {transform_indices = @transform_19, window_bounds = array<i64: 1, 1, 64>}, {transform_indices = @transform_20, window_bounds = array<i64: 1, 64, 32>}, {transform_indices = @transform_21, window_bounds = array<i64: 1, 1, 32>}, {transform_indices = @transform_22, window_bounds = array<i64: 1, 1, 32>}, {transform_indices = @transform_23, window_bounds = array<i64: 1, 1, 32>}, {pipeline_mode = #tpu.pipeline_mode<synchronous>, transform_indices = @transform_24, window_bounds = array<i64: 32, 128>}, {pipeline_mode = #tpu.pipeline_mode<synchronous>, transform_indices = @transform_25, window_bounds = array<i64: 1, 128>}, {pipeline_mode = #tpu.pipeline_mode<synchronous>, transform_indices = @transform_26, window_bounds = array<i64: 16, 128>}]} {
    %c0_i32 = arith.constant 0 : i32
    %0 = arith.cmpi eq, %arg0, %c0_i32 : i32
    %1 = arith.extui %0 : i1 to i32
    %c0_i32_0 = arith.constant 0 : i32
    %2 = arith.cmpi ne, %1, %c0_i32_0 : i32
    scf.if %2 {
      %c0_136 = arith.constant 0 : index
      %c0_137 = arith.constant 0 : index
      %284 = vector.load %arg1[%c0_136, %c0_137] : memref<16x32xf32, #tpu.memory_space<vmem>>, vector<16x32xf32>
      %c0_138 = arith.constant 0 : index
      %c0_139 = arith.constant 0 : index
      %285 = vector.load %arg28[%c0_138, %c0_139] : memref<16x32xf32, #tpu.memory_space<vmem>>, vector<16x32xf32>
      tpu.vector_store %arg28[%c0_138, %c0_139], %284 {strides = array<i32>} : memref<16x32xf32, #tpu.memory_space<vmem>>, vector<16x32xf32>,
    } else {
    }
    %c0 = arith.constant 0 : index
    %c0_1 = arith.constant 0 : index
    %3 = vector.load %arg28[%c0, %c0_1] : memref<16x32xf32, #tpu.memory_space<vmem>>, vector<16x32xf32>
    %c0_2 = arith.constant 0 : index
    %c0_3 = arith.constant 0 : index
    %4 = vector.load %arg2[%c0_2, %c0_3] : memref<16x32xf32, #tpu.memory_space<vmem>>, vector<16x32xf32>
    %c0_4 = arith.constant 0 : index
    %c0_5 = arith.constant 0 : index
    %5 = vector.load %arg3[%c0_4, %c0_5] : memref<16x16xf32, #tpu.memory_space<vmem>>, vector<16x16xf32>
    %c0_6 = arith.constant 0 : index
    %c0_7 = arith.constant 0 : index
    %c0_8 = arith.constant 0 : index
    %6 = vector.load %arg5[%c0_6, %c0_7, %c0_8] : memref<1x32x32xf32, #tpu.memory_space<vmem>>, vector<1x32x32xf32>
    %7 = vector.shape_cast %6 : vector<1x32x32xf32> to vector<32x32xf32>
    %c0_9 = arith.constant 0 : index
    %c0_10 = arith.constant 0 : index
    %c0_11 = arith.constant 0 : index
    %8 = vector.load %arg6[%c0_9, %c0_10, %c0_11] : memref<1x32x32xf32, #tpu.memory_space<vmem>>, vector<1x32x32xf32>
    %9 = vector.shape_cast %8 : vector<1x32x32xf32> to vector<32x32xf32>
    %c0_12 = arith.constant 0 : index
    %c0_13 = arith.constant 0 : index
    %c0_14 = arith.constant 0 : index
    %10 = vector.load %arg7[%c0_12, %c0_13, %c0_14] : memref<1x32x32xf32, #tpu.memory_space<vmem>>, vector<1x32x32xf32>
    %11 = vector.shape_cast %10 : vector<1x32x32xf32> to vector<32x32xf32>
    %c0_15 = arith.constant 0 : index
    %c0_16 = arith.constant 0 : index
    %c0_17 = arith.constant 0 : index
    %12 = vector.load %arg8[%c0_15, %c0_16, %c0_17] : memref<1x32x32xf32, #tpu.memory_space<vmem>>, vector<1x32x32xf32>
    %13 = vector.shape_cast %12 : vector<1x32x32xf32> to vector<32x32xf32>
    %c0_18 = arith.constant 0 : index
    %c0_19 = arith.constant 0 : index
    %c0_20 = arith.constant 0 : index
    %14 = vector.load %arg9[%c0_18, %c0_19, %c0_20] : memref<1x1x32xf32, #tpu.memory_space<vmem>>, vector<1x1x32xf32>
    %15 = vector.shape_cast %14 : vector<1x1x32xf32> to vector<1x32xf32>
    %cst = arith.constant dense<0.000000e+00> : vector<16x32xf32>
    %16 = tpu.matmul %3, %7, %cst {dimension_numbers = #tpu.dot_dimension_numbers<[1], [0], [0], [1], [0, 0, 1, 1], [], []>} : vector<16x32xf32>, vector<32x32xf32>, vector<16x32xf32> -> vector<16x32xf32>
    %cst_21 = arith.constant dense<0.000000e+00> : vector<16x32xf32>
    %17 = tpu.matmul %3, %9, %cst_21 {dimension_numbers = #tpu.dot_dimension_numbers<[1], [0], [0], [1], [0, 0, 1, 1], [], []>} : vector<16x32xf32>, vector<32x32xf32>, vector<16x32xf32> -> vector<16x32xf32>
    %cst_22 = arith.constant dense<0.000000e+00> : vector<16x32xf32>
    %18 = tpu.matmul %3, %11, %cst_22 {dimension_numbers = #tpu.dot_dimension_numbers<[1], [0], [0], [1], [0, 0, 1, 1], [], []>} : vector<16x32xf32>, vector<32x32xf32>, vector<16x32xf32> -> vector<16x32xf32>
    %cst_23 = arith.constant 5.000000e-01 : f32
    %19 = vector.broadcast %cst_23 : f32 to vector<16x16xf32>
    %20 = arith.cmpf ogt, %5, %19 : vector<16x16xf32>
    %cst_24 = arith.constant -5.000000e-01 : f32
    %21 = vector.broadcast %cst_24 : f32 to vector<16x16xf32>
    %22 = arith.cmpf olt, %5, %21 : vector<16x16xf32>
    %cst_25 = arith.constant 0xFF800000 : f32
    %cst_26 = arith.constant -1.000000e+20 : f32
    %23 = vector.broadcast %cst_25 : f32 to vector<16x16xf32>
    %24 = vector.broadcast %cst_26 : f32 to vector<16x16xf32>
    %25 = arith.select %22, %23, %24 : vector<16x16xi1>, vector<16x16xf32>
    %26 = vector.extract_strided_slice %16 {offsets = [0, 0], sizes = [16, 8], strides = [1, 1]} : vector<16x32xf32> to vector<16x8xf32>
    %27 = vector.extract_strided_slice %17 {offsets = [0, 0], sizes = [16, 8], strides = [1, 1]} : vector<16x32xf32> to vector<16x8xf32>
    %cst_27 = arith.constant dense<0.000000e+00> : vector<16x16xf32>
    %28 = tpu.matmul %26, %27, %cst_27 {dimension_numbers = #tpu.dot_dimension_numbers<[1], [1], [0], [0], [0, 0, 1, 0], [], []>} : vector<16x8xf32>, vector<16x8xf32>, vector<16x16xf32> -> vector<16x16xf32>
    %29 = arith.select %20, %28, %25 : vector<16x16xi1>, vector<16x16xf32>
    %cst_28 = arith.constant dense<0xFF800000> : vector<16xf32>
    %30 = vector.multi_reduction <maximumf>, %29, %cst_28 [1] : vector<16x16xf32> to vector<16xf32>
    %31 = vector.shape_cast %30 : vector<16xf32> to vector<16x1xf32>
    %32 = vector.broadcast %31 : vector<16x1xf32> to vector<16x16xf32>
    %33 = arith.subf %29, %32 : vector<16x16xf32>
    %34 = math.exp %33 : vector<16x16xf32>
    %cst_29 = arith.constant dense<0.000000e+00> : vector<16xf32>
    %35 = vector.multi_reduction <add>, %34, %cst_29 [1] : vector<16x16xf32> to vector<16xf32>
    %36 = vector.shape_cast %35 : vector<16xf32> to vector<16x1xf32>
    %37 = tpu.reciprocal %36 {approx = true} : vector<16x1xf32> -> vector<16x1xf32>
    %38 = vector.broadcast %37 : vector<16x1xf32> to vector<16x16xf32>
    %39 = arith.mulf %34, %38 : vector<16x16xf32>
    %40 = vector.extract_strided_slice %18 {offsets = [0, 0], sizes = [16, 8], strides = [1, 1]} : vector<16x32xf32> to vector<16x8xf32>
    %cst_30 = arith.constant dense<0.000000e+00> : vector<16x8xf32>
    %41 = tpu.matmul %39, %40, %cst_30 {dimension_numbers = #tpu.dot_dimension_numbers<[1], [0], [0], [1], [0, 0, 1, 1], [], []>} : vector<16x16xf32>, vector<16x8xf32>, vector<16x8xf32> -> vector<16x8xf32>
    %42 = vector.extract_strided_slice %16 {offsets = [0, 8], sizes = [16, 8], strides = [1, 1]} : vector<16x32xf32> to vector<16x8xf32>
    %43 = vector.extract_strided_slice %17 {offsets = [0, 8], sizes = [16, 8], strides = [1, 1]} : vector<16x32xf32> to vector<16x8xf32>
    %cst_31 = arith.constant dense<0.000000e+00> : vector<16x16xf32>
    %44 = tpu.matmul %42, %43, %cst_31 {dimension_numbers = #tpu.dot_dimension_numbers<[1], [1], [0], [0], [0, 0, 1, 0], [], []>} : vector<16x8xf32>, vector<16x8xf32>, vector<16x16xf32> -> vector<16x16xf32>
    %45 = arith.select %20, %44, %25 : vector<16x16xi1>, vector<16x16xf32>
    %cst_32 = arith.constant dense<0xFF800000> : vector<16xf32>
    %46 = vector.multi_reduction <maximumf>, %45, %cst_32 [1] : vector<16x16xf32> to vector<16xf32>
    %47 = vector.shape_cast %46 : vector<16xf32> to vector<16x1xf32>
    %48 = vector.broadcast %47 : vector<16x1xf32> to vector<16x16xf32>
    %49 = arith.subf %45, %48 : vector<16x16xf32>
    %50 = math.exp %49 : vector<16x16xf32>
    %cst_33 = arith.constant dense<0.000000e+00> : vector<16xf32>
    %51 = vector.multi_reduction <add>, %50, %cst_33 [1] : vector<16x16xf32> to vector<16xf32>
    %52 = vector.shape_cast %51 : vector<16xf32> to vector<16x1xf32>
    %53 = tpu.reciprocal %52 {approx = true} : vector<16x1xf32> -> vector<16x1xf32>
    %54 = vector.broadcast %53 : vector<16x1xf32> to vector<16x16xf32>
    %55 = arith.mulf %50, %54 : vector<16x16xf32>
    %56 = vector.extract_strided_slice %18 {offsets = [0, 8], sizes = [16, 8], strides = [1, 1]} : vector<16x32xf32> to vector<16x8xf32>
    %cst_34 = arith.constant dense<0.000000e+00> : vector<16x8xf32>
    %57 = tpu.matmul %55, %56, %cst_34 {dimension_numbers = #tpu.dot_dimension_numbers<[1], [0], [0], [1], [0, 0, 1, 1], [], []>} : vector<16x16xf32>, vector<16x8xf32>, vector<16x8xf32> -> vector<16x8xf32>
    %58 = vector.extract_strided_slice %16 {offsets = [0, 16], sizes = [16, 8], strides = [1, 1]} : vector<16x32xf32> to vector<16x8xf32>
    %59 = vector.extract_strided_slice %17 {offsets = [0, 16], sizes = [16, 8], strides = [1, 1]} : vector<16x32xf32> to vector<16x8xf32>
    %cst_35 = arith.constant dense<0.000000e+00> : vector<16x16xf32>
    %60 = tpu.matmul %58, %59, %cst_35 {dimension_numbers = #tpu.dot_dimension_numbers<[1], [1], [0], [0], [0, 0, 1, 0], [], []>} : vector<16x8xf32>, vector<16x8xf32>, vector<16x16xf32> -> vector<16x16xf32>
    %61 = arith.select %20, %60, %25 : vector<16x16xi1>, vector<16x16xf32>
    %cst_36 = arith.constant dense<0xFF800000> : vector<16xf32>
    %62 = vector.multi_reduction <maximumf>, %61, %cst_36 [1] : vector<16x16xf32> to vector<16xf32>
    %63 = vector.shape_cast %62 : vector<16xf32> to vector<16x1xf32>
    %64 = vector.broadcast %63 : vector<16x1xf32> to vector<16x16xf32>
    %65 = arith.subf %61, %64 : vector<16x16xf32>
    %66 = math.exp %65 : vector<16x16xf32>
    %cst_37 = arith.constant dense<0.000000e+00> : vector<16xf32>
    %67 = vector.multi_reduction <add>, %66, %cst_37 [1] : vector<16x16xf32> to vector<16xf32>
    %68 = vector.shape_cast %67 : vector<16xf32> to vector<16x1xf32>
    %69 = tpu.reciprocal %68 {approx = true} : vector<16x1xf32> -> vector<16x1xf32>
    %70 = vector.broadcast %69 : vector<16x1xf32> to vector<16x16xf32>
    %71 = arith.mulf %66, %70 : vector<16x16xf32>
    %72 = vector.extract_strided_slice %18 {offsets = [0, 16], sizes = [16, 8], strides = [1, 1]} : vector<16x32xf32> to vector<16x8xf32>
    %cst_38 = arith.constant dense<0.000000e+00> : vector<16x8xf32>
    %73 = tpu.matmul %71, %72, %cst_38 {dimension_numbers = #tpu.dot_dimension_numbers<[1], [0], [0], [1], [0, 0, 1, 1], [], []>} : vector<16x16xf32>, vector<16x8xf32>, vector<16x8xf32> -> vector<16x8xf32>
    %74 = vector.extract_strided_slice %16 {offsets = [0, 24], sizes = [16, 8], strides = [1, 1]} : vector<16x32xf32> to vector<16x8xf32>
    %75 = vector.extract_strided_slice %17 {offsets = [0, 24], sizes = [16, 8], strides = [1, 1]} : vector<16x32xf32> to vector<16x8xf32>
    %cst_39 = arith.constant dense<0.000000e+00> : vector<16x16xf32>
    %76 = tpu.matmul %74, %75, %cst_39 {dimension_numbers = #tpu.dot_dimension_numbers<[1], [1], [0], [0], [0, 0, 1, 0], [], []>} : vector<16x8xf32>, vector<16x8xf32>, vector<16x16xf32> -> vector<16x16xf32>
    %77 = arith.select %20, %76, %25 : vector<16x16xi1>, vector<16x16xf32>
    %cst_40 = arith.constant dense<0xFF800000> : vector<16xf32>
    %78 = vector.multi_reduction <maximumf>, %77, %cst_40 [1] : vector<16x16xf32> to vector<16xf32>
    %79 = vector.shape_cast %78 : vector<16xf32> to vector<16x1xf32>
    %80 = vector.broadcast %79 : vector<16x1xf32> to vector<16x16xf32>
    %81 = arith.subf %77, %80 : vector<16x16xf32>
    %82 = math.exp %81 : vector<16x16xf32>
    %cst_41 = arith.constant dense<0.000000e+00> : vector<16xf32>
    %83 = vector.multi_reduction <add>, %82, %cst_41 [1] : vector<16x16xf32> to vector<16xf32>
    %84 = vector.shape_cast %83 : vector<16xf32> to vector<16x1xf32>
    %85 = tpu.reciprocal %84 {approx = true} : vector<16x1xf32> -> vector<16x1xf32>
    %86 = vector.broadcast %85 : vector<16x1xf32> to vector<16x16xf32>
    %87 = arith.mulf %82, %86 : vector<16x16xf32>
    %88 = vector.extract_strided_slice %18 {offsets = [0, 24], sizes = [16, 8], strides = [1, 1]} : vector<16x32xf32> to vector<16x8xf32>
    %cst_42 = arith.constant dense<0.000000e+00> : vector<16x8xf32>
    %89 = tpu.matmul %87, %88, %cst_42 {dimension_numbers = #tpu.dot_dimension_numbers<[1], [0], [0], [1], [0, 0, 1, 1], [], []>} : vector<16x16xf32>, vector<16x8xf32>, vector<16x8xf32> -> vector<16x8xf32>
    %90 = tpu.concatenate %41, %57, %73, %89 in 1 : vector<16x8xf32>, vector<16x8xf32>, vector<16x8xf32>, vector<16x8xf32> -> vector<16x32xf32>
    %cst_43 = arith.constant dense<0.000000e+00> : vector<16x32xf32>
    %91 = tpu.matmul %90, %13, %cst_43 {dimension_numbers = #tpu.dot_dimension_numbers<[1], [0], [0], [1], [0, 0, 1, 1], [], []>} : vector<16x32xf32>, vector<32x32xf32>, vector<16x32xf32> -> vector<16x32xf32>
    %92 = vector.broadcast %15 : vector<1x32xf32> to vector<16x32xf32>
    %93 = arith.addf %91, %92 : vector<16x32xf32>
    %c0_44 = arith.constant 0 : index
    %c0_45 = arith.constant 0 : index
    %c0_46 = arith.constant 0 : index
    %94 = vector.load %arg10[%c0_44, %c0_45, %c0_46] : memref<1x1x32xf32, #tpu.memory_space<vmem>>, vector<1x1x32xf32>
    %95 = vector.shape_cast %94 : vector<1x1x32xf32> to vector<1x32xf32>
    %c0_47 = arith.constant 0 : index
    %c0_48 = arith.constant 0 : index
    %c0_49 = arith.constant 0 : index
    %96 = vector.load %arg11[%c0_47, %c0_48, %c0_49] : memref<1x1x32xf32, #tpu.memory_space<vmem>>, vector<1x1x32xf32>
    %97 = vector.shape_cast %96 : vector<1x1x32xf32> to vector<1x32xf32>
    %98 = arith.addf %93, %3 : vector<16x32xf32>
    %cst_50 = arith.constant dense<0.000000e+00> : vector<16xf32>
    %99 = vector.multi_reduction <add>, %98, %cst_50 [1] : vector<16x32xf32> to vector<16xf32>
    %100 = vector.shape_cast %99 : vector<16xf32> to vector<16x1xf32>
    %cst_51 = arith.constant 3.200000e+01 : f32
    %101 = vector.broadcast %cst_51 : f32 to vector<16x1xf32>
    %102 = arith.divf %100, %101 : vector<16x1xf32>
    %103 = vector.broadcast %102 : vector<16x1xf32> to vector<16x32xf32>
    %104 = arith.subf %98, %103 : vector<16x32xf32>
    %105 = arith.mulf %104, %104 : vector<16x32xf32>
    %cst_52 = arith.constant dense<0.000000e+00> : vector<16xf32>
    %106 = vector.multi_reduction <add>, %105, %cst_52 [1] : vector<16x32xf32> to vector<16xf32>
    %107 = vector.shape_cast %106 : vector<16xf32> to vector<16x1xf32>
    %cst_53 = arith.constant 3.200000e+01 : f32
    %108 = vector.broadcast %cst_53 : f32 to vector<16x1xf32>
    %109 = arith.divf %107, %108 : vector<16x1xf32>
    %110 = vector.broadcast %102 : vector<16x1xf32> to vector<16x32xf32>
    %111 = arith.subf %98, %110 : vector<16x32xf32>
    %cst_54 = arith.constant 9.99999974E-6 : f32
    %112 = vector.broadcast %cst_54 : f32 to vector<16x1xf32>
    %113 = arith.addf %109, %112 : vector<16x1xf32>
    %114 = math.rsqrt %113 : vector<16x1xf32>
    %115 = vector.broadcast %114 : vector<16x1xf32> to vector<16x32xf32>
    %116 = arith.mulf %111, %115 : vector<16x32xf32>
    %117 = vector.broadcast %95 : vector<1x32xf32> to vector<16x32xf32>
    %118 = arith.mulf %116, %117 : vector<16x32xf32>
    %119 = vector.broadcast %97 : vector<1x32xf32> to vector<16x32xf32>
    %120 = arith.addf %118, %119 : vector<16x32xf32>
    %c0_55 = arith.constant 0 : index
    %c0_56 = arith.constant 0 : index
    %121 = vector.load %arg4[%c0_55, %c0_56] : memref<16x16xf32, #tpu.memory_space<vmem>>, vector<16x16xf32>
    %c0_57 = arith.constant 0 : index
    %c0_58 = arith.constant 0 : index
    %c0_59 = arith.constant 0 : index
    %122 = vector.load %arg12[%c0_57, %c0_58, %c0_59] : memref<1x32x32xf32, #tpu.memory_space<vmem>>, vector<1x32x32xf32>
    %123 = vector.shape_cast %122 : vector<1x32x32xf32> to vector<32x32xf32>
    %c0_60 = arith.constant 0 : index
    %c0_61 = arith.constant 0 : index
    %c0_62 = arith.constant 0 : index
    %124 = vector.load %arg13[%c0_60, %c0_61, %c0_62] : memref<1x32x32xf32, #tpu.memory_space<vmem>>, vector<1x32x32xf32>
    %125 = vector.shape_cast %124 : vector<1x32x32xf32> to vector<32x32xf32>
    %c0_63 = arith.constant 0 : index
    %c0_64 = arith.constant 0 : index
    %c0_65 = arith.constant 0 : index
    %126 = vector.load %arg14[%c0_63, %c0_64, %c0_65] : memref<1x32x32xf32, #tpu.memory_space<vmem>>, vector<1x32x32xf32>
    %127 = vector.shape_cast %126 : vector<1x32x32xf32> to vector<32x32xf32>
    %c0_66 = arith.constant 0 : index
    %c0_67 = arith.constant 0 : index
    %c0_68 = arith.constant 0 : index
    %128 = vector.load %arg15[%c0_66, %c0_67, %c0_68] : memref<1x32x32xf32, #tpu.memory_space<vmem>>, vector<1x32x32xf32>
    %129 = vector.shape_cast %128 : vector<1x32x32xf32> to vector<32x32xf32>
    %c0_69 = arith.constant 0 : index
    %c0_70 = arith.constant 0 : index
    %c0_71 = arith.constant 0 : index
    %130 = vector.load %arg16[%c0_69, %c0_70, %c0_71] : memref<1x1x32xf32, #tpu.memory_space<vmem>>, vector<1x1x32xf32>
    %131 = vector.shape_cast %130 : vector<1x1x32xf32> to vector<1x32xf32>
    %cst_72 = arith.constant dense<0.000000e+00> : vector<16x32xf32>
    %132 = tpu.matmul %120, %123, %cst_72 {dimension_numbers = #tpu.dot_dimension_numbers<[1], [0], [0], [1], [0, 0, 1, 1], [], []>} : vector<16x32xf32>, vector<32x32xf32>, vector<16x32xf32> -> vector<16x32xf32>
    %cst_73 = arith.constant dense<0.000000e+00> : vector<16x32xf32>
    %133 = tpu.matmul %4, %125, %cst_73 {dimension_numbers = #tpu.dot_dimension_numbers<[1], [0], [0], [1], [0, 0, 1, 1], [], []>} : vector<16x32xf32>, vector<32x32xf32>, vector<16x32xf32> -> vector<16x32xf32>
    %cst_74 = arith.constant dense<0.000000e+00> : vector<16x32xf32>
    %134 = tpu.matmul %4, %127, %cst_74 {dimension_numbers = #tpu.dot_dimension_numbers<[1], [0], [0], [1], [0, 0, 1, 1], [], []>} : vector<16x32xf32>, vector<32x32xf32>, vector<16x32xf32> -> vector<16x32xf32>
    %cst_75 = arith.constant 5.000000e-01 : f32
    %135 = vector.broadcast %cst_75 : f32 to vector<16x16xf32>
    %136 = arith.cmpf ogt, %121, %135 : vector<16x16xf32>
    %cst_76 = arith.constant -5.000000e-01 : f32
    %137 = vector.broadcast %cst_76 : f32 to vector<16x16xf32>
    %138 = arith.cmpf olt, %121, %137 : vector<16x16xf32>
    %cst_77 = arith.constant 0xFF800000 : f32
    %cst_78 = arith.constant -1.000000e+20 : f32
    %139 = vector.broadcast %cst_77 : f32 to vector<16x16xf32>
    %140 = vector.broadcast %cst_78 : f32 to vector<16x16xf32>
    %141 = arith.select %138, %139, %140 : vector<16x16xi1>, vector<16x16xf32>
    %142 = vector.extract_strided_slice %132 {offsets = [0, 0], sizes = [16, 8], strides = [1, 1]} : vector<16x32xf32> to vector<16x8xf32>
    %143 = vector.extract_strided_slice %133 {offsets = [0, 0], sizes = [16, 8], strides = [1, 1]} : vector<16x32xf32> to vector<16x8xf32>
    %cst_79 = arith.constant dense<0.000000e+00> : vector<16x16xf32>
    %144 = tpu.matmul %142, %143, %cst_79 {dimension_numbers = #tpu.dot_dimension_numbers<[1], [1], [0], [0], [0, 0, 1, 0], [], []>} : vector<16x8xf32>, vector<16x8xf32>, vector<16x16xf32> -> vector<16x16xf32>
    %145 = arith.select %136, %144, %141 : vector<16x16xi1>, vector<16x16xf32>
    %cst_80 = arith.constant dense<0xFF800000> : vector<16xf32>
    %146 = vector.multi_reduction <maximumf>, %145, %cst_80 [1] : vector<16x16xf32> to vector<16xf32>
    %147 = vector.shape_cast %146 : vector<16xf32> to vector<16x1xf32>
    %148 = vector.broadcast %147 : vector<16x1xf32> to vector<16x16xf32>
    %149 = arith.subf %145, %148 : vector<16x16xf32>
    %150 = math.exp %149 : vector<16x16xf32>
    %cst_81 = arith.constant dense<0.000000e+00> : vector<16xf32>
    %151 = vector.multi_reduction <add>, %150, %cst_81 [1] : vector<16x16xf32> to vector<16xf32>
    %152 = vector.shape_cast %151 : vector<16xf32> to vector<16x1xf32>
    %153 = tpu.reciprocal %152 {approx = true} : vector<16x1xf32> -> vector<16x1xf32>
    %154 = vector.broadcast %153 : vector<16x1xf32> to vector<16x16xf32>
    %155 = arith.mulf %150, %154 : vector<16x16xf32>
    %156 = vector.extract_strided_slice %134 {offsets = [0, 0], sizes = [16, 8], strides = [1, 1]} : vector<16x32xf32> to vector<16x8xf32>
    %cst_82 = arith.constant dense<0.000000e+00> : vector<16x8xf32>
    %157 = tpu.matmul %155, %156, %cst_82 {dimension_numbers = #tpu.dot_dimension_numbers<[1], [0], [0], [1], [0, 0, 1, 1], [], []>} : vector<16x16xf32>, vector<16x8xf32>, vector<16x8xf32> -> vector<16x8xf32>
    %158 = vector.extract_strided_slice %132 {offsets = [0, 8], sizes = [16, 8], strides = [1, 1]} : vector<16x32xf32> to vector<16x8xf32>
    %159 = vector.extract_strided_slice %133 {offsets = [0, 8], sizes = [16, 8], strides = [1, 1]} : vector<16x32xf32> to vector<16x8xf32>
    %cst_83 = arith.constant dense<0.000000e+00> : vector<16x16xf32>
    %160 = tpu.matmul %158, %159, %cst_83 {dimension_numbers = #tpu.dot_dimension_numbers<[1], [1], [0], [0], [0, 0, 1, 0], [], []>} : vector<16x8xf32>, vector<16x8xf32>, vector<16x16xf32> -> vector<16x16xf32>
    %161 = arith.select %136, %160, %141 : vector<16x16xi1>, vector<16x16xf32>
    %cst_84 = arith.constant dense<0xFF800000> : vector<16xf32>
    %162 = vector.multi_reduction <maximumf>, %161, %cst_84 [1] : vector<16x16xf32> to vector<16xf32>
    %163 = vector.shape_cast %162 : vector<16xf32> to vector<16x1xf32>
    %164 = vector.broadcast %163 : vector<16x1xf32> to vector<16x16xf32>
    %165 = arith.subf %161, %164 : vector<16x16xf32>
    %166 = math.exp %165 : vector<16x16xf32>
    %cst_85 = arith.constant dense<0.000000e+00> : vector<16xf32>
    %167 = vector.multi_reduction <add>, %166, %cst_85 [1] : vector<16x16xf32> to vector<16xf32>
    %168 = vector.shape_cast %167 : vector<16xf32> to vector<16x1xf32>
    %169 = tpu.reciprocal %168 {approx = true} : vector<16x1xf32> -> vector<16x1xf32>
    %170 = vector.broadcast %169 : vector<16x1xf32> to vector<16x16xf32>
    %171 = arith.mulf %166, %170 : vector<16x16xf32>
    %172 = vector.extract_strided_slice %134 {offsets = [0, 8], sizes = [16, 8], strides = [1, 1]} : vector<16x32xf32> to vector<16x8xf32>
    %cst_86 = arith.constant dense<0.000000e+00> : vector<16x8xf32>
    %173 = tpu.matmul %171, %172, %cst_86 {dimension_numbers = #tpu.dot_dimension_numbers<[1], [0], [0], [1], [0, 0, 1, 1], [], []>} : vector<16x16xf32>, vector<16x8xf32>, vector<16x8xf32> -> vector<16x8xf32>
    %174 = vector.extract_strided_slice %132 {offsets = [0, 16], sizes = [16, 8], strides = [1, 1]} : vector<16x32xf32> to vector<16x8xf32>
    %175 = vector.extract_strided_slice %133 {offsets = [0, 16], sizes = [16, 8], strides = [1, 1]} : vector<16x32xf32> to vector<16x8xf32>
    %cst_87 = arith.constant dense<0.000000e+00> : vector<16x16xf32>
    %176 = tpu.matmul %174, %175, %cst_87 {dimension_numbers = #tpu.dot_dimension_numbers<[1], [1], [0], [0], [0, 0, 1, 0], [], []>} : vector<16x8xf32>, vector<16x8xf32>, vector<16x16xf32> -> vector<16x16xf32>
    %177 = arith.select %136, %176, %141 : vector<16x16xi1>, vector<16x16xf32>
    %cst_88 = arith.constant dense<0xFF800000> : vector<16xf32>
    %178 = vector.multi_reduction <maximumf>, %177, %cst_88 [1] : vector<16x16xf32> to vector<16xf32>
    %179 = vector.shape_cast %178 : vector<16xf32> to vector<16x1xf32>
    %180 = vector.broadcast %179 : vector<16x1xf32> to vector<16x16xf32>
    %181 = arith.subf %177, %180 : vector<16x16xf32>
    %182 = math.exp %181 : vector<16x16xf32>
    %cst_89 = arith.constant dense<0.000000e+00> : vector<16xf32>
    %183 = vector.multi_reduction <add>, %182, %cst_89 [1] : vector<16x16xf32> to vector<16xf32>
    %184 = vector.shape_cast %183 : vector<16xf32> to vector<16x1xf32>
    %185 = tpu.reciprocal %184 {approx = true} : vector<16x1xf32> -> vector<16x1xf32>
    %186 = vector.broadcast %185 : vector<16x1xf32> to vector<16x16xf32>
    %187 = arith.mulf %182, %186 : vector<16x16xf32>
    %188 = vector.extract_strided_slice %134 {offsets = [0, 16], sizes = [16, 8], strides = [1, 1]} : vector<16x32xf32> to vector<16x8xf32>
    %cst_90 = arith.constant dense<0.000000e+00> : vector<16x8xf32>
    %189 = tpu.matmul %187, %188, %cst_90 {dimension_numbers = #tpu.dot_dimension_numbers<[1], [0], [0], [1], [0, 0, 1, 1], [], []>} : vector<16x16xf32>, vector<16x8xf32>, vector<16x8xf32> -> vector<16x8xf32>
    %190 = vector.extract_strided_slice %132 {offsets = [0, 24], sizes = [16, 8], strides = [1, 1]} : vector<16x32xf32> to vector<16x8xf32>
    %191 = vector.extract_strided_slice %133 {offsets = [0, 24], sizes = [16, 8], strides = [1, 1]} : vector<16x32xf32> to vector<16x8xf32>
    %cst_91 = arith.constant dense<0.000000e+00> : vector<16x16xf32>
    %192 = tpu.matmul %190, %191, %cst_91 {dimension_numbers = #tpu.dot_dimension_numbers<[1], [1], [0], [0], [0, 0, 1, 0], [], []>} : vector<16x8xf32>, vector<16x8xf32>, vector<16x16xf32> -> vector<16x16xf32>
    %193 = arith.select %136, %192, %141 : vector<16x16xi1>, vector<16x16xf32>
    %cst_92 = arith.constant dense<0xFF800000> : vector<16xf32>
    %194 = vector.multi_reduction <maximumf>, %193, %cst_92 [1] : vector<16x16xf32> to vector<16xf32>
    %195 = vector.shape_cast %194 : vector<16xf32> to vector<16x1xf32>
    %196 = vector.broadcast %195 : vector<16x1xf32> to vector<16x16xf32>
    %197 = arith.subf %193, %196 : vector<16x16xf32>
    %198 = math.exp %197 : vector<16x16xf32>
    %cst_93 = arith.constant dense<0.000000e+00> : vector<16xf32>
    %199 = vector.multi_reduction <add>, %198, %cst_93 [1] : vector<16x16xf32> to vector<16xf32>
    %200 = vector.shape_cast %199 : vector<16xf32> to vector<16x1xf32>
    %201 = tpu.reciprocal %200 {approx = true} : vector<16x1xf32> -> vector<16x1xf32>
    %202 = vector.broadcast %201 : vector<16x1xf32> to vector<16x16xf32>
    %203 = arith.mulf %198, %202 : vector<16x16xf32>
    %204 = vector.extract_strided_slice %134 {offsets = [0, 24], sizes = [16, 8], strides = [1, 1]} : vector<16x32xf32> to vector<16x8xf32>
    %cst_94 = arith.constant dense<0.000000e+00> : vector<16x8xf32>
    %205 = tpu.matmul %203, %204, %cst_94 {dimension_numbers = #tpu.dot_dimension_numbers<[1], [0], [0], [1], [0, 0, 1, 1], [], []>} : vector<16x16xf32>, vector<16x8xf32>, vector<16x8xf32> -> vector<16x8xf32>
    %206 = tpu.concatenate %157, %173, %189, %205 in 1 : vector<16x8xf32>, vector<16x8xf32>, vector<16x8xf32>, vector<16x8xf32> -> vector<16x32xf32>
    %cst_95 = arith.constant dense<0.000000e+00> : vector<16x32xf32>
    %207 = tpu.matmul %206, %129, %cst_95 {dimension_numbers = #tpu.dot_dimension_numbers<[1], [0], [0], [1], [0, 0, 1, 1], [], []>} : vector<16x32xf32>, vector<32x32xf32>, vector<16x32xf32> -> vector<16x32xf32>
    %208 = vector.broadcast %131 : vector<1x32xf32> to vector<16x32xf32>
    %209 = arith.addf %207, %208 : vector<16x32xf32>
    %c0_96 = arith.constant 0 : index
    %c0_97 = arith.constant 0 : index
    %c0_98 = arith.constant 0 : index
    %210 = vector.load %arg17[%c0_96, %c0_97, %c0_98] : memref<1x1x32xf32, #tpu.memory_space<vmem>>, vector<1x1x32xf32>
    %211 = vector.shape_cast %210 : vector<1x1x32xf32> to vector<1x32xf32>
    %c0_99 = arith.constant 0 : index
    %c0_100 = arith.constant 0 : index
    %c0_101 = arith.constant 0 : index
    %212 = vector.load %arg18[%c0_99, %c0_100, %c0_101] : memref<1x1x32xf32, #tpu.memory_space<vmem>>, vector<1x1x32xf32>
    %213 = vector.shape_cast %212 : vector<1x1x32xf32> to vector<1x32xf32>
    %214 = arith.addf %209, %120 : vector<16x32xf32>
    %cst_102 = arith.constant dense<0.000000e+00> : vector<16xf32>
    %215 = vector.multi_reduction <add>, %214, %cst_102 [1] : vector<16x32xf32> to vector<16xf32>
    %216 = vector.shape_cast %215 : vector<16xf32> to vector<16x1xf32>
    %cst_103 = arith.constant 3.200000e+01 : f32
    %217 = vector.broadcast %cst_103 : f32 to vector<16x1xf32>
    %218 = arith.divf %216, %217 : vector<16x1xf32>
    %219 = vector.broadcast %218 : vector<16x1xf32> to vector<16x32xf32>
    %220 = arith.subf %214, %219 : vector<16x32xf32>
    %221 = arith.mulf %220, %220 : vector<16x32xf32>
    %cst_104 = arith.constant dense<0.000000e+00> : vector<16xf32>
    %222 = vector.multi_reduction <add>, %221, %cst_104 [1] : vector<16x32xf32> to vector<16xf32>
    %223 = vector.shape_cast %222 : vector<16xf32> to vector<16x1xf32>
    %cst_105 = arith.constant 3.200000e+01 : f32
    %224 = vector.broadcast %cst_105 : f32 to vector<16x1xf32>
    %225 = arith.divf %223, %224 : vector<16x1xf32>
    %226 = vector.broadcast %218 : vector<16x1xf32> to vector<16x32xf32>
    %227 = arith.subf %214, %226 : vector<16x32xf32>
    %cst_106 = arith.constant 9.99999974E-6 : f32
    %228 = vector.broadcast %cst_106 : f32 to vector<16x1xf32>
    %229 = arith.addf %225, %228 : vector<16x1xf32>
    %230 = math.rsqrt %229 : vector<16x1xf32>
    %231 = vector.broadcast %230 : vector<16x1xf32> to vector<16x32xf32>
    %232 = arith.mulf %227, %231 : vector<16x32xf32>
    %233 = vector.broadcast %211 : vector<1x32xf32> to vector<16x32xf32>
    %234 = arith.mulf %232, %233 : vector<16x32xf32>
    %235 = vector.broadcast %213 : vector<1x32xf32> to vector<16x32xf32>
    %236 = arith.addf %234, %235 : vector<16x32xf32>
    %c0_107 = arith.constant 0 : index
    %c0_108 = arith.constant 0 : index
    %c0_109 = arith.constant 0 : index
    %237 = vector.load %arg19[%c0_107, %c0_108, %c0_109] : memref<1x32x64xf32, #tpu.memory_space<vmem>>, vector<1x32x64xf32>
    %238 = vector.shape_cast %237 : vector<1x32x64xf32> to vector<32x64xf32>
    %cst_110 = arith.constant dense<0.000000e+00> : vector<16x64xf32>
    %239 = tpu.matmul %236, %238, %cst_110 {dimension_numbers = #tpu.dot_dimension_numbers<[1], [0], [0], [1], [0, 0, 1, 1], [], []>} : vector<16x32xf32>, vector<32x64xf32>, vector<16x64xf32> -> vector<16x64xf32>
    %c0_111 = arith.constant 0 : index
    %c0_112 = arith.constant 0 : index
    %c0_113 = arith.constant 0 : index
    %240 = vector.load %arg20[%c0_111, %c0_112, %c0_113] : memref<1x1x64xf32, #tpu.memory_space<vmem>>, vector<1x1x64xf32>
    %241 = vector.shape_cast %240 : vector<1x1x64xf32> to vector<1x64xf32>
    %242 = vector.broadcast %241 : vector<1x64xf32> to vector<16x64xf32>
    %243 = arith.addf %239, %242 : vector<16x64xf32>
    %cst_114 = arith.constant 0.000000e+00 : f32
    %244 = vector.broadcast %cst_114 : f32 to vector<16x64xf32>
    %245 = arith.maximumf %243, %244 : vector<16x64xf32>
    %c0_115 = arith.constant 0 : index
    %c0_116 = arith.constant 0 : index
    %c0_117 = arith.constant 0 : index
    %246 = vector.load %arg21[%c0_115, %c0_116, %c0_117] : memref<1x64x32xf32, #tpu.memory_space<vmem>>, vector<1x64x32xf32>
    %247 = vector.shape_cast %246 : vector<1x64x32xf32> to vector<64x32xf32>
    %cst_118 = arith.constant dense<0.000000e+00> : vector<16x32xf32>
    %248 = tpu.matmul %245, %247, %cst_118 {dimension_numbers = #tpu.dot_dimension_numbers<[1], [0], [0], [1], [0, 0, 1, 1], [], []>} : vector<16x64xf32>, vector<64x32xf32>, vector<16x32xf32> -> vector<16x32xf32>
    %c0_119 = arith.constant 0 : index
    %c0_120 = arith.constant 0 : index
    %c0_121 = arith.constant 0 : index
    %249 = vector.load %arg22[%c0_119, %c0_120, %c0_121] : memref<1x1x32xf32, #tpu.memory_space<vmem>>, vector<1x1x32xf32>
    %250 = vector.shape_cast %249 : vector<1x1x32xf32> to vector<1x32xf32>
    %251 = vector.broadcast %250 : vector<1x32xf32> to vector<16x32xf32>
    %252 = arith.addf %248, %251 : vector<16x32xf32>
    %c0_122 = arith.constant 0 : index
    %c0_123 = arith.constant 0 : index
    %c0_124 = arith.constant 0 : index
    %253 = vector.load %arg23[%c0_122, %c0_123, %c0_124] : memref<1x1x32xf32, #tpu.memory_space<vmem>>, vector<1x1x32xf32>
    %254 = vector.shape_cast %253 : vector<1x1x32xf32> to vector<1x32xf32>
    %c0_125 = arith.constant 0 : index
    %c0_126 = arith.constant 0 : index
    %c0_127 = arith.constant 0 : index
    %255 = vector.load %arg24[%c0_125, %c0_126, %c0_127] : memref<1x1x32xf32, #tpu.memory_space<vmem>>, vector<1x1x32xf32>
    %256 = vector.shape_cast %255 : vector<1x1x32xf32> to vector<1x32xf32>
    %257 = arith.addf %252, %236 : vector<16x32xf32>
    %cst_128 = arith.constant dense<0.000000e+00> : vector<16xf32>
    %258 = vector.multi_reduction <add>, %257, %cst_128 [1] : vector<16x32xf32> to vector<16xf32>
    %259 = vector.shape_cast %258 : vector<16xf32> to vector<16x1xf32>
    %cst_129 = arith.constant 3.200000e+01 : f32
    %260 = vector.broadcast %cst_129 : f32 to vector<16x1xf32>
    %261 = arith.divf %259, %260 : vector<16x1xf32>
    %262 = vector.broadcast %261 : vector<16x1xf32> to vector<16x32xf32>
    %263 = arith.subf %257, %262 : vector<16x32xf32>
    %264 = arith.mulf %263, %263 : vector<16x32xf32>
    %cst_130 = arith.constant dense<0.000000e+00> : vector<16xf32>
    %265 = vector.multi_reduction <add>, %264, %cst_130 [1] : vector<16x32xf32> to vector<16xf32>
    %266 = vector.shape_cast %265 : vector<16xf32> to vector<16x1xf32>
    %cst_131 = arith.constant 3.200000e+01 : f32
    %267 = vector.broadcast %cst_131 : f32 to vector<16x1xf32>
    %268 = arith.divf %266, %267 : vector<16x1xf32>
    %269 = vector.broadcast %261 : vector<16x1xf32> to vector<16x32xf32>
    %270 = arith.subf %257, %269 : vector<16x32xf32>
    %cst_132 = arith.constant 9.99999974E-6 : f32
    %271 = vector.broadcast %cst_132 : f32 to vector<16x1xf32>
    %272 = arith.addf %268, %271 : vector<16x1xf32>
    %273 = math.rsqrt %272 : vector<16x1xf32>
    %274 = vector.broadcast %273 : vector<16x1xf32> to vector<16x32xf32>
    %275 = arith.mulf %270, %274 : vector<16x32xf32>
    %276 = vector.broadcast %254 : vector<1x32xf32> to vector<16x32xf32>
    %277 = arith.mulf %275, %276 : vector<16x32xf32>
    %278 = vector.broadcast %256 : vector<1x32xf32> to vector<16x32xf32>
    %279 = arith.addf %277, %278 : vector<16x32xf32>
    %c0_133 = arith.constant 0 : index
    %c0_134 = arith.constant 0 : index
    %280 = vector.load %arg28[%c0_133, %c0_134] : memref<16x32xf32, #tpu.memory_space<vmem>>, vector<16x32xf32>
    tpu.vector_store %arg28[%c0_133, %c0_134], %279 {strides = array<i32>} : memref<16x32xf32, #tpu.memory_space<vmem>>, vector<16x32xf32>,
    %c1_i32 = arith.constant 1 : i32
    %281 = arith.cmpi eq, %arg0, %c1_i32 : i32
    %282 = arith.extui %281 : i1 to i32
    %c0_i32_135 = arith.constant 0 : i32
    %283 = arith.cmpi ne, %282, %c0_i32_135 : i32
    scf.if %283 {
      %c0_136 = arith.constant 0 : index
      %c0_137 = arith.constant 0 : index
      %284 = vector.load %arg25[%c0_136, %c0_137] : memref<32x128xf32, #tpu.memory_space<vmem>>, vector<32x128xf32>
      %cst_138 = arith.constant dense<0.000000e+00> : vector<16x128xf32>
      %285 = tpu.matmul %279, %284, %cst_138 {dimension_numbers = #tpu.dot_dimension_numbers<[1], [0], [0], [1], [0, 0, 1, 1], [], []>} : vector<16x32xf32>, vector<32x128xf32>, vector<16x128xf32> -> vector<16x128xf32>
      %c0_139 = arith.constant 0 : index
      %c0_140 = arith.constant 0 : index
      %286 = vector.load %arg26[%c0_139, %c0_140] : memref<1x128xf32, #tpu.memory_space<vmem>>, vector<1x128xf32>
      %287 = vector.broadcast %286 : vector<1x128xf32> to vector<16x128xf32>
      %288 = arith.addf %285, %287 : vector<16x128xf32>
      %c0_141 = arith.constant 0 : index
      %c0_142 = arith.constant 0 : index
      %289 = vector.load %arg27[%c0_141, %c0_142] : memref<16x128xf32, #tpu.memory_space<vmem>>, vector<16x128xf32>
      tpu.vector_store %arg27[%c0_141, %c0_142], %288 {strides = array<i32>} : memref<16x128xf32, #tpu.memory_space<vmem>>, vector<16x128xf32>,
    } else {
    }
    return
  }
  func.func @transform_0(%arg0: i32) -> (i32, i32) {
    %c0_i32 = arith.constant 0 : i32
    %c0_i32_0 = arith.constant 0 : i32
    %c0_i32_1 = arith.constant 0 : i32
    return %c0_i32, %c0_i32_0 : i32, i32
  }
  func.func @transform_1(%arg0: i32) -> (i32, i32) {
    %c0_i32 = arith.constant 0 : i32
    %c0_i32_0 = arith.constant 0 : i32
    %c0_i32_1 = arith.constant 0 : i32
    return %c0_i32, %c0_i32_0 : i32, i32
  }
  func.func @transform_2(%arg0: i32) -> (i32, i32) {
    %c0_i32 = arith.constant 0 : i32
    %c0_i32_0 = arith.constant 0 : i32
    %c0_i32_1 = arith.constant 0 : i32
    return %c0_i32, %c0_i32_0 : i32, i32
  }
  func.func @transform_3(%arg0: i32) -> (i32, i32) {
    %c0_i32 = arith.constant 0 : i32
    %c0_i32_0 = arith.constant 0 : i32
    %c0_i32_1 = arith.constant 0 : i32
    return %c0_i32, %c0_i32_0 : i32, i32
  }
  func.func @transform_4(%arg0: i32) -> (i32, i32, i32) {
    %c0_i32 = arith.constant 0 : i32
    %c0_i32_0 = arith.constant 0 : i32
    %c0_i32_1 = arith.constant 0 : i32
    return %arg0, %c0_i32, %c0_i32_0 : i32, i32, i32
  }
  func.func @transform_5(%arg0: i32) -> (i32, i32, i32) {
    %c0_i32 = arith.constant 0 : i32
    %c0_i32_0 = arith.constant 0 : i32
    %c0_i32_1 = arith.constant 0 : i32
    return %arg0, %c0_i32, %c0_i32_0 : i32, i32, i32
  }
  func.func @transform_6(%arg0: i32) -> (i32, i32, i32) {
    %c0_i32 = arith.constant 0 : i32
    %c0_i32_0 = arith.constant 0 : i32
    %c0_i32_1 = arith.constant 0 : i32
    return %arg0, %c0_i32, %c0_i32_0 : i32, i32, i32
  }
  func.func @transform_7(%arg0: i32) -> (i32, i32, i32) {
    %c0_i32 = arith.constant 0 : i32
    %c0_i32_0 = arith.constant 0 : i32
    %c0_i32_1 = arith.constant 0 : i32
    return %arg0, %c0_i32, %c0_i32_0 : i32, i32, i32
  }
  func.func @transform_8(%arg0: i32) -> (i32, i32, i32) {
    %c0_i32 = arith.constant 0 : i32
    %c0_i32_0 = arith.constant 0 : i32
    %c0_i32_1 = arith.constant 0 : i32
    return %arg0, %c0_i32, %c0_i32_0 : i32, i32, i32
  }
  func.func @transform_9(%arg0: i32) -> (i32, i32, i32) {
    %c0_i32 = arith.constant 0 : i32
    %c0_i32_0 = arith.constant 0 : i32
    %c0_i32_1 = arith.constant 0 : i32
    return %arg0, %c0_i32, %c0_i32_0 : i32, i32, i32
  }
  func.func @transform_10(%arg0: i32) -> (i32, i32, i32) {
    %c0_i32 = arith.constant 0 : i32
    %c0_i32_0 = arith.constant 0 : i32
    %c0_i32_1 = arith.constant 0 : i32
    return %arg0, %c0_i32, %c0_i32_0 : i32, i32, i32
  }
  func.func @transform_11(%arg0: i32) -> (i32, i32, i32) {
    %c0_i32 = arith.constant 0 : i32
    %c0_i32_0 = arith.constant 0 : i32
    %c0_i32_1 = arith.constant 0 : i32
    return %arg0, %c0_i32, %c0_i32_0 : i32, i32, i32
  }
  func.func @transform_12(%arg0: i32) -> (i32, i32, i32) {
    %c0_i32 = arith.constant 0 : i32
    %c0_i32_0 = arith.constant 0 : i32
    %c0_i32_1 = arith.constant 0 : i32
    return %arg0, %c0_i32, %c0_i32_0 : i32, i32, i32
  }
  func.func @transform_13(%arg0: i32) -> (i32, i32, i32) {
    %c0_i32 = arith.constant 0 : i32
    %c0_i32_0 = arith.constant 0 : i32
    %c0_i32_1 = arith.constant 0 : i32
    return %arg0, %c0_i32, %c0_i32_0 : i32, i32, i32
  }
  func.func @transform_14(%arg0: i32) -> (i32, i32, i32) {
    %c0_i32 = arith.constant 0 : i32
    %c0_i32_0 = arith.constant 0 : i32
    %c0_i32_1 = arith.constant 0 : i32
    return %arg0, %c0_i32, %c0_i32_0 : i32, i32, i32
  }
  func.func @transform_15(%arg0: i32) -> (i32, i32, i32) {
    %c0_i32 = arith.constant 0 : i32
    %c0_i32_0 = arith.constant 0 : i32
    %c0_i32_1 = arith.constant 0 : i32
    return %arg0, %c0_i32, %c0_i32_0 : i32, i32, i32
  }
  func.func @transform_16(%arg0: i32) -> (i32, i32, i32) {
    %c0_i32 = arith.constant 0 : i32
    %c0_i32_0 = arith.constant 0 : i32
    %c0_i32_1 = arith.constant 0 : i32
    return %arg0, %c0_i32, %c0_i32_0 : i32, i32, i32
  }
  func.func @transform_17(%arg0: i32) -> (i32, i32, i32) {
    %c0_i32 = arith.constant 0 : i32
    %c0_i32_0 = arith.constant 0 : i32
    %c0_i32_1 = arith.constant 0 : i32
    return %arg0, %c0_i32, %c0_i32_0 : i32, i32, i32
  }
  func.func @transform_18(%arg0: i32) -> (i32, i32, i32) {
    %c0_i32 = arith.constant 0 : i32
    %c0_i32_0 = arith.constant 0 : i32
    %c0_i32_1 = arith.constant 0 : i32
    return %arg0, %c0_i32, %c0_i32_0 : i32, i32, i32
  }
  func.func @transform_19(%arg0: i32) -> (i32, i32, i32) {
    %c0_i32 = arith.constant 0 : i32
    %c0_i32_0 = arith.constant 0 : i32
    %c0_i32_1 = arith.constant 0 : i32
    return %arg0, %c0_i32, %c0_i32_0 : i32, i32, i32
  }
  func.func @transform_20(%arg0: i32) -> (i32, i32, i32) {
    %c0_i32 = arith.constant 0 : i32
    %c0_i32_0 = arith.constant 0 : i32
    %c0_i32_1 = arith.constant 0 : i32
    return %arg0, %c0_i32, %c0_i32_0 : i32, i32, i32
  }
  func.func @transform_21(%arg0: i32) -> (i32, i32, i32) {
    %c0_i32 = arith.constant 0 : i32
    %c0_i32_0 = arith.constant 0 : i32
    %c0_i32_1 = arith.constant 0 : i32
    return %arg0, %c0_i32, %c0_i32_0 : i32, i32, i32
  }
  func.func @transform_22(%arg0: i32) -> (i32, i32, i32) {
    %c0_i32 = arith.constant 0 : i32
    %c0_i32_0 = arith.constant 0 : i32
    %c0_i32_1 = arith.constant 0 : i32
    return %arg0, %c0_i32, %c0_i32_0 : i32, i32, i32
  }
  func.func @transform_23(%arg0: i32) -> (i32, i32, i32) {
    %c0_i32 = arith.constant 0 : i32
    %c0_i32_0 = arith.constant 0 : i32
    %c0_i32_1 = arith.constant 0 : i32
    return %arg0, %c0_i32, %c0_i32_0 : i32, i32, i32
  }
  func.func @transform_24(%arg0: i32) -> (i32, i32) {
    %c0_i32 = arith.constant 0 : i32
    %c0_i32_0 = arith.constant 0 : i32
    %c0_i32_1 = arith.constant 0 : i32
    return %c0_i32, %c0_i32_0 : i32, i32
  }
  func.func @transform_25(%arg0: i32) -> (i32, i32) {
    %c0_i32 = arith.constant 0 : i32
    %c0_i32_0 = arith.constant 0 : i32
    %c0_i32_1 = arith.constant 0 : i32
    return %c0_i32, %c0_i32_0 : i32, i32
  }
  func.func @transform_26(%arg0: i32) -> (i32, i32) {
    %c0_i32 = arith.constant 0 : i32
    %c0_i32_0 = arith.constant 0 : i32
    %c0_i32_1 = arith.constant 0 : i32
    return %c0_i32, %c0_i32_0 : i32, i32
  }
}

</mosaic_0001>

<bundles_post_ra>
// kernel: decoder_forward.1
= control target key start
LH: loop header
LB: loop body
LE: loop exit
PB: predicated region body
PF: predicated region fallthrough
CT: control target
= control target key end

     0   :  { %s3151_s27 = smov 0   ;;  %s3643_s0 = inlined_call_operand.vmem [shape: f32[16,32], index: 0, kind: input, shape index: {}]   ;;  %s3644_s1 = inlined_call_operand.vmem [shape: f32[16,32], index: 1, kind: input, shape index: {}]   ;;  %s3645_s2 = inlined_call_operand.vmem [shape: f32[16,16], index: 2, kind: input, shape index: {}]   ;;  %s3646_s3 = inlined_call_operand.vmem [shape: f32[16,16], index: 3, kind: input, shape index: {}]   ;;  %s3647_s4 = inlined_call_operand.vmem [shape: f32[2,32,32], index: 4, kind: input, shape index: {}]   ;;  %s3648_s5 = inlined_call_operand.vmem [shape: f32[2,32,32], index: 5, kind: input, shape index: {}]   ;;  %s3649_s6 = inlined_call_operand.vmem [shape: f32[2,32,32], index: 6, kind: input, shape index: {}]   ;;  %s3650_s7 = inlined_call_operand.vmem [shape: f32[2,32,32], index: 7, kind: input, shape index: {}]   ;;  %s3651_s8 = inlined_call_operand.vmem [shape: f32[2,1,32], index: 8, kind: input, shape index: {}]   ;;  %s3652_s9 = inlined_call_operand.vmem [shape: f32[2,1,32], index: 9, kind: input, shape index: {}]   ;;  %s3653_s10 = inlined_call_operand.vmem [shape: f32[2,1,32], index: 10, kind: input, shape index: {}]   ;;  %s3654_s11 = inlined_call_operand.vmem [shape: f32[2,32,32], index: 11, kind: input, shape index: {}]   ;;  %s3655_s12 = inlined_call_operand.vmem [shape: f32[2,32,32], index: 12, kind: input, shape index: {}]   ;;  %s3656_s13 = inlined_call_operand.vmem [shape: f32[2,32,32], index: 13, kind: input, shape index: {}]   ;;  %s3657_s14 = inlined_call_operand.vmem [shape: f32[2,32,32], index: 14, kind: input, shape index: {}]   ;;  %s3658_s15 = inlined_call_operand.vmem [shape: f32[2,1,32], index: 15, kind: input, shape index: {}]   ;;  %s3659_s16 = inlined_call_operand.vmem [shape: f32[2,1,32], index: 16, kind: input, shape index: {}]   ;;  %s3660_s17 = inlined_call_operand.vmem [shape: f32[2,1,32], index: 17, kind: input, shape index: {}]   ;;  %s3661_s18 = inlined_call_operand.vmem [shape: f32[2,32,64], index: 18, kind: input, shape index: {}]   ;;  %s3662_s19 = inlined_call_operand.vmem [shape: f32[2,1,64], index: 19, kind: input, shape index: {}]   ;;  %s3663_s20 = inlined_call_operand.vmem [shape: f32[2,64,32], index: 20, kind: input, shape index: {}]   ;;  %s3664_s21 = inlined_call_operand.vmem [shape: f32[2,1,32], index: 21, kind: input, shape index: {}]   ;;  %s3665_s22 = inlined_call_operand.vmem [shape: f32[2,1,32], index: 22, kind: input, shape index: {}]   ;;  %s3666_s23 = inlined_call_operand.vmem [shape: f32[2,1,32], index: 23, kind: input, shape index: {}]   ;;  %s3667_s24 = inlined_call_operand.vmem [shape: f32[32,128], index: 24, kind: input, shape index: {}]   ;;  %s3668_s25 = inlined_call_operand.vmem [shape: f32[1,128], index: 25, kind: input, shape index: {}]   ;;  %s3669_s26 = inlined_call_operand.vmem [shape: f32[16,128], index: 26, kind: output, shape index: {}]  }
   0x1   :  { %3681 = sst [smem:[#allocation8_spill]] %s3643_s0 }
   0x2   :  { %3682 = sst [smem:[#allocation9_spill]] %s3644_s1 }
   0x3   :  { %3683 = sst [smem:[#allocation10_spill]] %s3645_s2 }
   0x4   :  { %3684 = sst [smem:[#allocation11_spill]] %s3646_s3 }
   0x5   :  { %3685 = sst [smem:[#allocation12_spill]] %s3647_s4 }
   0x6   :  { %3686 = sst [smem:[#allocation13_spill]] %s3648_s5 }
   0x7   :  { %3687 = sst [smem:[#allocation14_spill]] %s3649_s6 }
   0x8   :  { %3688 = sst [smem:[#allocation15_spill]] %s3650_s7 }
   0x9   :  { %3689 = sst [smem:[#allocation16_spill]] %s3651_s8 }
   0xa   :  { %3690 = sst [smem:[#allocation17_spill]] %s3652_s9 }
   0xb   :  { %3691 = sst [smem:[#allocation18_spill]] %s3653_s10 }
   0xc   :  { %3692 = sst [smem:[#allocation19_spill]] %s3654_s11 }
   0xd   :  { %3693 = sst [smem:[#allocation20_spill]] %s3655_s12 }
   0xe   :  { %3694 = sst [smem:[#allocation21_spill]] %s3656_s13 }
   0xf   :  { %3695 = sst [smem:[#allocation22_spill]] %s3657_s14 }
  0x10   :  { %3696 = sst [smem:[#allocation23_spill]] %s3661_s18 }
  0x11   :  { %3697 = sst [smem:[#allocation24_spill]] %s3666_s23 }
  0x12   :  { %3698 = sst [smem:[#allocation25_spill]] %s3667_s24 }
  0x13   :  { %3699 = sst [smem:[#allocation26_spill]] %s3668_s25 }
  0x14   :  { %3700 = sst [smem:[#allocation27_spill]] %s3669_s26 }
  0x15 LB: > { %3701 = sst [smem:[#allocation3_spill]] %s3006_s27  ;;  %s3157_s3 = sadd.s32 4294967295, %s3006_s27   ;;  %s3006_s27 = sphi %s3151_s27, %s36_s27  }
  0x16   : > { %3702 = sst [smem:[#allocation4_spill]] %s3157_s3  ;;  %p2748_p0 = scmp.ge.s32.totalorder %s3006_s27, 1 }
  0x17   : > { %p877_p1 = scmp.lt.s32.totalorder %s3006_s27, 3 }
  0x19   : > { %p878_p2 = pnand %p2748_p0, %p877_p1 }
  0x1b   : > { %881 = sbr.rel (%p878_p2) target bundleno = 3391 (0xd3f), region = 124 }
  0x20   : > { %p1017_p3 = scmp.lt.s32.totalorder %s3157_s3, 1  ;;  %s3704_s2 = sld [smem:[#allocation12_spill]] }
  0x21   : > { %s3706_s1 = sld [smem:[#allocation13_spill]] }
  0x22   : > { %s3163_s7 = scalar_select %p1017_p3, %s3157_s3, 1 }
  0x23   : > { %s3708_s24 = sld [smem:[#allocation14_spill]] }
  0x24   : > { %s2843_s28 = sshll.u32 %s3163_s7, 5  ;;  %s3710_s29 = sld [smem:[#allocation15_spill]] }
  0x25   : > { %s3713_s11 = sld [smem:[#allocation19_spill]]  ;;  %s1093_s4 = scalar_lea.vmem %s3665_s22, %s3163_s7 }
  0x26   : > { %s3173_s5 = scalar_lea.vmem %s3704_s2, %s2843_s28  ;;  %s3714_s12 = sld [smem:[#allocation20_spill]] }
  0x27   : > { %3705 = sst [smem:[#allocation5_spill]] %s3173_s5  ;;  %s3178_s27 = scalar_lea.vmem %s3706_s1, %s2843_s28 }
  0x28   : > { %3707 = sst [smem:[#allocation6_spill]] %s3178_s27  ;;  %s1090_s5 = scalar_lea.vmem %s3664_s21, %s3163_s7 }
  0x29   : > { %s3183_s3 = scalar_lea.vmem %s3708_s24, %s2843_s28  ;;  %s3715_s13 = sld [smem:[#allocation21_spill]] }
  0x2a   : > { %3709 = sst [smem:[#allocation7_spill]] %s3183_s3  ;;  %s3188_s0 = scalar_lea.vmem %s3710_s29, %s2843_s28 }
  0x2b   : > { %s3201_s24 = scalar_lea.vmem %s3713_s11, %s2843_s28  ;;  %s3716_s14 = sld [smem:[#allocation22_spill]] }
  0x2c   : > { %s3206_s8 = scalar_lea.vmem %s3714_s12, %s2843_s28  ;;  %s3717_s18 = sld [smem:[#allocation23_spill]] }
  0x2d   : > { %s3719_s30 = sld [smem:[#allocation4_spill]] }
  0x2f   : > { %s3211_s9 = scalar_lea.vmem %s3715_s13, %s2843_s28 }
  0x31   : > { %s3216_s10 = scalar_lea.vmem %s3716_s14, %s2843_s28  ;;  %s2852_s14 = sshll.u32 %s3163_s7, 6 }
  0x32   : > { %s3233_s12 = scalar_lea.vmem %s3717_s18, %s2843_s28  ;;  %s3243_s23 = scalar_lea.vmem %s3663_s20, %s2852_s14 }
  0x33   : > { %p2769_p4 = scmp.ne.s32.totalorder %s3719_s30, 0 }
  0x34   : > { %s3720_s6 = sld [smem:[#allocation8_spill]] (!%p2769_p4) }
  0x35   : > { %1100 = sbr.rel (%p2769_p4) target bundleno = 61 (0x3d), region = 128 }
  0x3a   : > { %v1101_v0 = vld [vmem:[%s3720_s6] sm:$0xff]  ;;  %vm1103_vm0 = vcmask 261120   ;;  %v1102_v1 = vld [vmem:[%s3720_s6 + $0x8] sm:$0xff] }
  0x3b   : > { %1104 = vst.msk [vmem:[#allocation2] sm:$0xff] %vm1103_vm0, %v1101_v0 }
  0x3c   : > { %1105 = vst.msk [vmem:[#allocation2 + $0x8] sm:$0xff] %vm1103_vm0, %v1102_v1 }
  0x3d PF: > { %s3721_s11 = sld [smem:[#allocation5_spill]]  ;;  %vm1129_vm1 = vcmask 261120   ;;  %s3008_s13 = smov 120   ;;  %vm1211_vm2 = vcmask 64512   ;;  %v3011_v30 = vmov -1e+20  }
  0x3e   : > { %s3722_s27 = sld [smem:[#allocation6_spill]]  ;;  %s3009_s3 = smov 112   ;;  %vm1249_vm5 = vcmask 130048   ;;  %vm1625_vm8 = vcmask 195584  }
  0x3f   : > { %s3010_s25 = smov 104   ;;  %s3723_s26 = sld [smem:[#allocation7_spill]] }
  0x40   : > { %s3724_s30 = sld [smem:[#allocation10_spill]]  ;;  %s3012_s1 = smov 8  }
  0x41   : > { %s3725_s28 = sld [smem:[#allocation16_spill]] }
  0x42   : > { %v3272_v10 = vld [vmem:[#allocation2] sm:$0xff]  ;;  %s3728_s2 = sld [smem:[#allocation17_spill]] }
  0x43   : > { %v1115_v2 = vld [vmem:[%s3721_s11 + $0x18] sm:$0xff]  ;;  %v1114_v4 = vld [vmem:[%s3721_s11 + $0x10] sm:$0xff]  ;;  %v1113_v6 = vld [vmem:[%s3721_s11 + $0x8] sm:$0xff] }
  0x44   : > { %v1119_v3 = vld [vmem:[%s3722_s27 + $0x18] sm:$0xff]  ;;  %1148 = vmatpush.msra.mxu0 %v1115_v2  ;;  %v1118_v5 = vld [vmem:[%s3722_s27 + $0x10] sm:$0xff]  ;;  %2853 = vmatpush.msra.mxu2 %v1115_v2  ;;  %v1117_v7 = vld [vmem:[%s3722_s27 + $0x8] sm:$0xff] }
  0x45   : > { %2857 = vmatpush.msra.mxu3 %v1119_v3  ;;  %v1112_v8 = vld [vmem:[%s3721_s11] sm:$0xff]  ;;  %1171 = vmatpush.msra.mxu1 %v1119_v3  ;;  %v3274_v11 = vld [vmem:[#allocation2 + $0x8] sm:$0xff]  ;;  %v1123_v20 = vld [vmem:[%s3723_s26 + $0x18] sm:$0xff]  ;;  %s3013_s11 = smov 16  }
  0x46   : > { %v1116_v9 = vld [vmem:[%s3722_s27] sm:$0xff]  ;;  %1149 = vmatpush.msra.mxu0 %v1114_v4  ;;  %2854 = vmatpush.msra.mxu2 %v1114_v4  ;;  %v1122_v21 = vld [vmem:[%s3723_s26 + $0x10] sm:$0xff]  ;;  %v1121_v22 = vld [vmem:[%s3723_s26 + $0x8] sm:$0xff]  ;;  %s3014_s27 = smov 24  }
  0x47   : > { %2858 = vmatpush.msra.mxu3 %v1118_v5  ;;  %1172 = vmatpush.msra.mxu1 %v1118_v5  ;;  %v1120_v24 = vld [vmem:[%s3723_s26] sm:$0xff]  ;;  %v1111_v33 = vld [vmem:[%s3724_s30 + $0x8] sm:$0xff]  ;;  %s3726_s29 = scalar_lea.vmem %s3725_s28, %s3163_s7  ;;  %s3730_s28 = sld [smem:[#allocation18_spill]] }
  0x48   : > { %1150 = vmatpush.msra.mxu0 %v1113_v6  ;;  %2855 = vmatpush.msra.mxu2 %v1113_v6  ;;  %v3315_v28 = vld [vmem:[%s3724_s30] sm:$0xff]  ;;  %vm1208_vm6 = vcmp.lt.f32.partialorder %v1111_v33, -0.5  ;;  %vm1206_vm7 = vcmp.gt.f32.partialorder %v1111_v33, 0.5  ;;  %s3729_s14 = scalar_lea.vmem %s3728_s2, %s3163_s7 }
  0x49   : > { %2859 = vmatpush.msra.mxu3 %v1117_v7  ;;  %1173 = vmatpush.msra.mxu1 %v1117_v7  ;;  %vm1207_vm3 = vcmp.lt.f32.partialorder %v3315_v28, -0.5  ;;  %vm1205_vm4 = vcmp.gt.f32.partialorder %v3315_v28, 0.5  ;;  %v1210_v38 = vsel %vm1208_vm6, -inf, %v3011_v30 }
  0x4a   : > { %1151 = vmatpush.msra.mxu0 %v1112_v8  ;;  %2856 = vmatpush.msra.mxu2 %v1112_v8  ;;  %v1209_v31 = vsel %vm1207_vm3, -inf, %v3011_v30 }
  0x4b   : > { %2860 = vmatpush.msra.mxu3 %v1116_v9  ;;  %2770 = vmatmul.msk.f32.vlgmr.msra.gmra.mxu0 %vm1129_vm1, %v3272_v10 }
  0x4c   : > { %2773 = vmatmul.msk.f32.vlgmr.msra.gmra.mxu3 %vm1129_vm1, %v3274_v11  ;;  %1174 = vmatpush.msra.mxu1 %v1116_v9 }
  0x4d   : > { %2771 = vmatmul.msk.f32.vlgmr.msra.gmra.mxu2 %vm1129_vm1, %v3274_v11  ;;  %2772 = vmatmul.msk.f32.vlgmr.msra.gmra.mxu1 %vm1129_vm1, %v3272_v10  ;;  %s3731_s18 = scalar_lea.vmem %s3730_s28, %s3163_s7  ;;  %s3736_s28 = scalar_lea.vmem %s3662_s19, %s3163_s7 }
  0x4e   : > { %1194 = vmatpush.msrb.mxu2 %v1123_v20 }
  0x50   : > { %1195 = vmatpush.msrb.mxu2 %v1122_v21 }
  0x52   : > { %1196 = vmatpush.msrb.mxu2 %v1121_v22 }
  0x54   : > { %1197 = vmatpush.msrb.mxu2 %v1120_v24 }
  0x55   : > { %2774 = vmatmul.msk.f32.vlgmr.msrb.gmra.mxu2 %vm1129_vm1, %v3272_v10 }
  0x5d   : > { %2775 = vmatmul.msk.f32.gmra.mxu2 %vm1129_vm1, %v3274_v11 }
  0xc8   : > { %v1153_v12 = vpop.f32.mrf.mxu0 }
  0xc9   : > { %1301 = vrot.lane.b32.xlu1 %v1153_v12, %s3008_s13 }
  0xca   : > { %v1176_v15 = vpop.f32.mrf.mxu1 }
  0xcf   : > { %v1179_v13 = vpop.f32.mrf.mxu3 }
  0xd0   : > { %1407 = vrot.lane.b32.xlu2 %v1179_v13, %s3009_s3  ;;  %1307 = vrot.lane.b32.xlu0 %v1179_v13, %s3008_s13  ;;  %v1156_v14 = vpop.f32.mrf.mxu2 }
  0xd1   : > { %2776 = vmatpush.xpose.msk.msrb.mxu3 %vm1211_vm2, %v1179_v13  ;;  %1303 = vrot.lane.b32.xlu1 %v1156_v14, %s3008_s13 }
  0xd5   : > { %2777 = vmatpush.xpose.msk.msrb.mxu3 %vm1211_vm2, %v1176_v15 }
  0xd8   : > { %2778 = vmatmul.msk.f32.vlgmr.msrb.gmra.mxu3 %vm1211_vm2, %v1153_v12  ;;  %1505 = vrot.lane.b32.xlu2 %v1179_v13, %s3010_s25  ;;  %v1199_v48 = vpop.f32.mrf.mxu2 }
  0xd9   : > { %1305 = vrot.lane.b32.xlu0 %v1176_v15, %s3008_s13  ;;  %1503 = vrot.lane.b32.xlu1 %v1176_v15, %s3010_s25 }
  0xe0   : > { %2779 = vmatmul.msk.f32.gmra.mxu3 %vm1211_vm2, %v1156_v14  ;;  %1401 = vrot.lane.b32.xlu2 %v1153_v12, %s3009_s3  ;;  %v1202_v56 = vpop.f32.mrf.mxu2 }
  0xe1   : > { %1405 = vrot.lane.b32.xlu0 %v1176_v15, %s3009_s3  ;;  %1403 = vrot.lane.b32.xlu1 %v1156_v14, %s3009_s3  ;;  %v2881_v9 = vpack.i.bf16 %v1199_v48, %v1202_v56 }
  0xe2   : > { %1292 = vmatpush.msrb.mxu0 %v1202_v56 }
  0xe4   : > { %1293 = vmatpush.msrb.mxu0 %v1199_v48 }
  0xe8   : > { %1501 = vrot.lane.b32.xlu2 %v1156_v14, %s3010_s25 }
  0xe9   : > { %1499 = vrot.lane.b32.xlu0 %v1153_v12, %s3010_s25 }
 0x12a   : > { %v1408_v16 = vpop.permute.xlu2 %1407 }
 0x12b   : > { %2788 = vmatpush.xpose.msk.msra.mxu3 %vm1211_vm2, %v1408_v16 }
 0x132   : > { %v1506_v25 = vpop.permute.xlu2 %1505 }
 0x13a   : > { %v1402_v29 = vpop.permute.xlu2 %1401 }
 0x13b   : > { %v1302_v17 = vpop.permute.xlu1 %1301 }
 0x142   : > { %v1308_v18 = vpop.permute.xlu0 %1307  ;;  %v1502_v42 = vpop.permute.xlu2 %1501 }
 0x143   : > { %2782 = vmatpush.xpose.msk.msrb.mxu1 %vm1211_vm2, %v1308_v18  ;;  %v1304_v19 = vpop.permute.xlu1 %1303 }
 0x14b   : > { %v1306_v23 = vpop.permute.xlu0 %1305  ;;  %v1504_v26 = vpop.permute.xlu1 %1503 }
 0x14c   : > { %2783 = vmatpush.xpose.msk.msrb.mxu1 %vm1211_vm2, %v1306_v23 }
 0x14f   : > { %2784 = vmatmul.msk.f32.vlgmr.msrb.gmra.mxu1 %vm1211_vm2, %v1302_v17 }
 0x150   : > { %2794 = vmatpush.xpose.msk.msra.mxu1 %vm1211_vm2, %v1506_v25 }
 0x153   : > { %v1406_v27 = vpop.permute.xlu0 %1405  ;;  %v1404_v36 = vpop.permute.xlu1 %1403 }
 0x154   : > { %2795 = vmatpush.xpose.msk.msra.mxu1 %vm1211_vm2, %v1504_v26  ;;  %2789 = vmatpush.xpose.msk.msra.mxu3 %vm1211_vm2, %v1406_v27 }
 0x157   : > { %2785 = vmatmul.msk.f32.gmra.mxu1 %vm1211_vm2, %v1304_v19  ;;  %2790 = vmatmul.msk.f32.vlgmr.msra.gmra.mxu3 %vm1211_vm2, %v1402_v29 }
 0x15b   : > { %v1241_v32 = vpop.f32.mrf.mxu3  ;;  %v1500_v37 = vpop.permute.xlu0 %1499 }
 0x15c   : > { %v1247_v34 = vsel %vm1205_vm4, %v1241_v32, %v1209_v31 }
 0x15d   : > { %v1250_v35 = vsel %vm1249_vm5, %v1247_v34, -inf }
 0x15e   : > { %1251 = vmax.xlane.f32.xlu1 %v1250_v35 }
 0x15f   : > { %2791 = vmatmul.msk.f32.gmra.mxu3 %vm1211_vm2, %v1404_v36  ;;  %2796 = vmatmul.msk.f32.vlgmr.msra.gmra.mxu1 %vm1211_vm2, %v1500_v37 }
 0x163   : > { %v1244_v39 = vpop.f32.mrf.mxu3 }
 0x164   : > { %v1248_v40 = vsel %vm1206_vm7, %v1244_v39, %v1210_v38 }
 0x165   : > { %v1253_v41 = vsel %vm1249_vm5, %v1248_v40, -inf }
 0x166   : > { %1254 = vmax.xlane.f32.xlu2 %v1253_v41 }
 0x167   : > { %2797 = vmatmul.msk.f32.gmra.mxu1 %vm1211_vm2, %v1502_v42 }
 0x1cc   : > { %v1334_v43 = vpop.f32.mrf.mxu1 }
 0x1cd   : > { %v1340_v44 = vsel %vm1205_vm4, %v1334_v43, %v1209_v31 }
 0x1ce   : > { %v1342_v45 = vsel %vm1249_vm5, %v1340_v44, -inf }
 0x1cf   : > { %1343 = vmax.xlane.f32.xlu0 %v1342_v45 }
 0x1d1   : > { %v1252_v46 = vpop.xlane.xlu1 %1251 }
 0x1d2   : > { %v1256_v47 = vsub.f32 %v1247_v34, %v1252_v46 }
 0x1d4   : > { %v1258_v49 = vmul.f32 1.442695, %v1256_v47  ;;  %v1337_v50 = vpop.f32.mrf.mxu1 }
 0x1d5   : > { %v1341_v51 = vsel %vm1206_vm7, %v1337_v50, %v1210_v38 }
 0x1d6   : > { %2921 = vpow2.f32 %v1258_v49  ;;  %v1345_v52 = vsel %vm1249_vm5, %v1341_v51, -inf }
 0x1d7   : > { %1346 = vmax.xlane.f32.xlu2 %v1345_v52 }
 0x1d9   : > { %v1255_v53 = vpop.xlane.xlu2 %1254 }
 0x1da   : > { %v1434_v54 = vpop.f32.mrf.mxu3  ;;  %v1257_v60 = vsub.f32 %v1248_v40, %v1255_v53 }
 0x1db   : > { %v1440_v55 = vsel %vm1205_vm4, %v1434_v54, %v1209_v31 }
 0x1dc   : > { %v2922_v57 = vpop.eup %2921  ;;  %v1532_v58 = vpop.f32.mrf.mxu1  ;;  %v1442_v59 = vsel %vm1249_vm5, %v1440_v55, -inf  ;;  %v1260_v62 = vmul.f32 1.442695, %v1257_v60 }
 0x1dd   : > { %1443 = vmax.xlane.f32.xlu1 %v1442_v59  ;;  %v1262_v61 = vsel %vm1249_vm5, %v2922_v57, 0.0  ;;  %v1538_v5 = vsel %vm1205_vm4, %v1532_v58, %v1209_v31 }
 0x1de   : > { %2923 = vpow2.f32 %v1260_v62  ;;  %v1540_v7 = vsel %vm1249_vm5, %v1538_v5, -inf }
 0x1df   : > { %1263 = vadd.xlane.f32.xlu2 %v1262_v61 }
 0x1e2   : > { %v1437_v63 = vpop.f32.mrf.mxu3 }
 0x1e3   : > { %v3347_v0 = vsel %vm1206_vm7, %v1437_v63, %v1210_v38 }
 0x1e4   : > { %v1535_v1 = vpop.f32.mrf.mxu1  ;;  %v1445_v2 = vsel %vm1249_vm5, %v3347_v0, -inf  ;;  %v2924_v6 = vpop.eup %2923 }
 0x1e5   : > { %1446 = vmax.xlane.f32.xlu0 %v1445_v2  ;;  %v1539_v3 = vsel %vm1206_vm7, %v1535_v1, %v1210_v38  ;;  %v1265_v8 = vsel %vm1249_vm5, %v2924_v6, 0.0 }
 0x1e6   : > { %v1543_v4 = vsel %vm1249_vm5, %v1539_v3, -inf }
 0x1e7   : > { %1544 = vmax.xlane.f32.xlu2 %v1543_v4 }
 0x1ed   : > { %1541 = vmax.xlane.f32.xlu0 %v1540_v7 }
 0x1ef   : > { %1266 = vadd.xlane.f32.xlu2 %v1265_v8 }
 0x201   : > { %2882 = vrot.lane.b32.xlu0 %v2881_v9, %s3008_s13 }
 0x242   : > { %v1344_v12 = vpop.xlane.xlu0 %1343 }
 0x243   : > { %v1348_v13 = vsub.f32 %v1340_v44, %v1344_v12 }
 0x245   : > { %v1350_v14 = vmul.f32 1.442695, %v1348_v13 }
 0x247   : > { %2925 = vpow2.f32 %v1350_v14 }
 0x24a   : > { %v1347_v15 = vpop.xlane.xlu2 %1346 }
 0x24b   : > { %v1349_v16 = vsub.f32 %v1341_v51, %v1347_v15 }
 0x24d   : > { %v2926_v17 = vpop.eup %2925  ;;  %v1352_v18 = vmul.f32 1.442695, %v1349_v16 }
 0x24e   : > { %v1354_v19 = vsel %vm1249_vm5, %v2926_v17, 0.0 }
 0x24f   : > { %2927 = vpow2.f32 %v1352_v18  ;;  %1355 = vadd.xlane.f32.xlu1 %v1354_v19 }
 0x250   : > { %v1444_v20 = vpop.xlane.xlu1 %1443 }
 0x251   : > { %v1448_v21 = vsub.f32 %v1440_v55, %v1444_v20  ;;  %v1127_v20 = vld [vmem:[%s3188_s0 + $0x18] sm:$0xff] }
 0x252   : > { %v1264_v22 = vpop.xlane.xlu2 %1263  ;;  %1649 = vmatpush.msrb.mxu3 %v1127_v20  ;;  %v2912_v20 = vld [vmem:[%s3729_s14] ss:$0 sm:$0xff]  ;;  %s3735_s14 = scalar_lea.vmem %s3660_s17, %s3163_s7 }
 0x253   : > { %v1450_v23 = vmul.f32 1.442695, %v1448_v21  ;;  %2929 = vrcp.f32 %v1264_v22  ;;  %v1126_v21 = vld [vmem:[%s3188_s0 + $0x10] sm:$0xff]  ;;  %v1125_v22 = vld [vmem:[%s3188_s0 + $0x8] sm:$0xff] }
 0x254   : > { %1650 = vmatpush.msrb.mxu3 %v1126_v21 }
 0x255   : > { %v2928_v24 = vpop.eup %2927  ;;  %2931 = vpow2.f32 %v1450_v23 }
 0x256   : > { %v1357_v25 = vsel %vm1249_vm5, %v2928_v24, 0.0  ;;  %1651 = vmatpush.msrb.mxu3 %v1125_v22 }
 0x257   : > { %1358 = vadd.xlane.f32.xlu1 %v1357_v25  ;;  %v1124_v25 = vld [vmem:[%s3188_s0] sm:$0xff]  ;;  %s3727_s0 = sld [smem:[#allocation9_spill]] }
 0x258   : > { %v1447_v26 = vpop.xlane.xlu0 %1446  ;;  %1652 = vmatpush.msrb.mxu3 %v1124_v25 }
 0x259   : > { %v2930_v27 = vpop.eup %2929  ;;  %v1449_v45 = vsub.f32 %v3347_v0, %v1447_v26 }
 0x25a   : > { %v1545_v28 = vpop.xlane.xlu2 %1544  ;;  %v1270_v29 = vmul.f32 %v2930_v27, %v2922_v57 }
 0x25b   : > { %v2932_v31 = vpop.eup %2931  ;;  %v1547_v32 = vsub.f32 %v1539_v3, %v1545_v28  ;;  %v1452_v46 = vmul.f32 1.442695, %v1449_v45 }
 0x25c   : > { %2780 = vmatmul.msk.f32.vlgmr.msrb.gmra.mxu0 %vm1249_vm5, %v1270_v29  ;;  %v1454_v33 = vsel %vm1249_vm5, %v2932_v31, 0.0 }
 0x25d   : > { %v1550_v34 = vmul.f32 1.442695, %v1547_v32  ;;  %1455 = vadd.xlane.f32.xlu2 %v1454_v33 }
 0x25f   : > { %2933 = vpow2.f32 %v1550_v34 }
 0x260   : > { %v1542_v35 = vpop.xlane.xlu0 %1541 }
 0x261   : > { %v1546_v36 = vsub.f32 %v1538_v5, %v1542_v35 }
 0x262   : > { %v1267_v37 = vpop.xlane.xlu2 %1266 }
 0x263   : > { %v1548_v38 = vmul.f32 1.442695, %v1546_v36  ;;  %2935 = vrcp.f32 %v1267_v37 }
 0x265   : > { %v2934_v39 = vpop.eup %2933  ;;  %2937 = vpow2.f32 %v1548_v38 }
 0x266   : > { %v1555_v40 = vsel %vm1249_vm5, %v2934_v39, 0.0  ;;  %2939 = vpow2.f32 %v1452_v46 }
 0x267   : > { %1556 = vadd.xlane.f32.xlu0 %v1555_v40 }
 0x269   : > { %v2936_v41 = vpop.eup %2935 }
 0x26a   : > { %v1271_v42 = vmul.f32 %v2936_v41, %v2924_v6 }
 0x26b   : > { %v2938_v43 = vpop.eup %2937 }
 0x26c   : > { %2781 = vmatmul.msk.f32.gmra.mxu0 %vm1249_vm5, %v1271_v42  ;;  %v1552_v44 = vsel %vm1249_vm5, %v2938_v43, 0.0  ;;  %v2940_v50 = vpop.eup %2939 }
 0x26d   : > { %1553 = vadd.xlane.f32.xlu1 %v1552_v44  ;;  %v1457_v51 = vsel %vm1249_vm5, %v2940_v50, 0.0 }
 0x273   : > { %v2883_v47 = vpop.permute.xlu0 %2882 }
 0x274   : > { %v2884_v48 = vunpack.i.l.bf16 %v2883_v47  ;;  %v2885_v49 = vunpack.i.h.bf16 %v2883_v47 }
 0x275   : > { %2892 = vrot.lane.b32.xlu2 %v2881_v9, %s3009_s3 }
 0x276   : > { %1392 = vmatpush.msra.mxu2 %v2884_v48  ;;  %v3015_v48 = vmov 32.0  }
 0x278   : > { %1393 = vmatpush.msra.mxu2 %v2885_v49 }
 0x286   : > { %2887 = vrot.lane.b32.xlu1 %v2881_v9, %s3010_s25 }
 0x2b0   : > { %1458 = vadd.xlane.f32.xlu1 %v1457_v51 }
 0x2c2   : > { %v1356_v52 = vpop.xlane.xlu1 %1355 }
 0x2c3   : > { %2941 = vrcp.f32 %v1356_v52 }
 0x2c9   : > { %v2942_v53 = vpop.eup %2941 }
 0x2ca   : > { %v1362_v54 = vmul.f32 %v2942_v53, %v2926_v17  ;;  %v1359_v55 = vpop.xlane.xlu1 %1358 }
 0x2cb   : > { %2943 = vrcp.f32 %v1359_v55 }
 0x2cc   : > { %2786 = vmatmul.msk.f32.vlgmr.msra.gmra.mxu2 %vm1249_vm5, %v1362_v54 }
 0x2d0   : > { %v1456_v56 = vpop.xlane.xlu2 %1455 }
 0x2d1   : > { %v2944_v57 = vpop.eup %2943  ;;  %2945 = vrcp.f32 %v1456_v56  ;;  %v1734_v56 = vld [vmem:[%s3206_s8 + $0x18] sm:$0xff] }
 0x2d2   : > { %v1363_v58 = vmul.f32 %v2944_v57, %v2928_v24  ;;  %1791 = vmatpush.msrb.mxu1 %v1734_v56  ;;  %v1735_v56 = vld [vmem:[%s3211_s9] sm:$0xff] }
 0x2d4   : > { %2787 = vmatmul.msk.f32.gmra.mxu2 %vm1249_vm5, %v1363_v58  ;;  %v1732_v58 = vld [vmem:[%s3206_s8 + $0x8] sm:$0xff] }
 0x2d7   : > { %v2946_v60 = vpop.eup %2945 }
 0x2d8   : > { %v2893_v59 = vpop.permute.xlu2 %2892  ;;  %v1462_v63 = vmul.f32 %v2946_v60, %v2932_v31  ;;  %v1731_v60 = vld [vmem:[%s3206_s8] sm:$0xff] }
 0x2d9   : > { %v2894_v61 = vunpack.i.l.bf16 %v2893_v59  ;;  %v2895_v62 = vunpack.i.h.bf16 %v2893_v59  ;;  %v1295_v14 = vpop.f32.mrf.mxu0 }
 0x2da   : > { %v1557_v1 = vpop.xlane.xlu0 %1556 }
 0x2db   : > { %1490 = vmatpush.msra.mxu0 %v2894_v61  ;;  %v3412_v61 = vld [vmem:[%s3727_s0] sm:$0xff] }
 0x2dd   : > { %1491 = vmatpush.msra.mxu0 %v2895_v62 }
 0x2de   : > { %2792 = vmatmul.msk.f32.vlgmr.msra.gmra.mxu0 %vm1249_vm5, %v1462_v63  ;;  %v3420_v63 = vld [vmem:[%s3727_s0 + $0x8] sm:$0xff] }
 0x2e0   : > { %v1554_v0 = vpop.xlane.xlu1 %1553 }
 0x2e1   : > { %2947 = vrcp.f32 %v1554_v0 }
 0x2e2   : > { %2949 = vrcp.f32 %v1557_v1 }
 0x2e7   : > { %v2948_v3 = vpop.eup %2947 }
 0x2e8   : > { %v1560_v6 = vmul.f32 %v2948_v3, %v2938_v43  ;;  %v2950_v7 = vpop.eup %2949 }
 0x2e9   : > { %v1561_v8 = vmul.f32 %v2950_v7, %v2934_v39  ;;  %v1298_v16 = vpop.f32.mrf.mxu0  ;;  %v2911_v39 = vld [vmem:[%s3726_s29] ss:$0 sm:$0xff]  ;;  %v1728_v7 = vld [vmem:[%s3201_s24 + $0x8] sm:$0xff]  ;;  %s3732_s29 = sld [smem:[#allocation11_spill]] }
 0x2f8   : > { %v2888_v2 = vpop.permute.xlu1 %2887 }
 0x2f9   : > { %v2889_v4 = vunpack.i.l.bf16 %v2888_v2  ;;  %v2890_v5 = vunpack.i.h.bf16 %v2888_v2 }
 0x2fb   : > { %1588 = vmatpush.msrb.mxu2 %v2889_v4 }
 0x2fd   : > { %1589 = vmatpush.msrb.mxu2 %v2890_v5  ;;  %v1730_v5 = vld [vmem:[%s3201_s24 + $0x18] sm:$0xff] }
 0x2fe   : > { %2798 = vmatmul.msk.f32.vlgmr.msrb.gmra.mxu2 %vm1249_vm5, %v1560_v6  ;;  %1762 = vmatpush.msrb.mxu0 %v1730_v5  ;;  %v1729_v6 = vld [vmem:[%s3201_s24 + $0x10] sm:$0xff] }
 0x300   : > { %1763 = vmatpush.msrb.mxu0 %v1729_v6 }
 0x302   : > { %1764 = vmatpush.msrb.mxu0 %v1728_v7 }
 0x306   : > { %2799 = vmatmul.msk.f32.gmra.mxu2 %vm1249_vm5, %v1561_v8  ;;  %v1727_v8 = vld [vmem:[%s3201_s24] sm:$0xff] }
 0x307   : > { %1765 = vmatpush.msrb.mxu0 %v1727_v8 }
 0x323   : > { %v1459_v9 = vpop.xlane.xlu1 %1458 }
 0x324   : > { %2951 = vrcp.f32 %v1459_v9 }
 0x325   : > { %2953 = vrcp.f32 %v3015_v48 }
 0x32a   : > { %v2952_v12 = vpop.eup %2951 }
 0x32b   : > { %v1463_v13 = vmul.f32 %v2952_v12, %v2940_v50  ;;  %v2954_v49 = vpop.eup %2953 }
 0x32c   : > { %v1671_v50 = vmul.f32 32.0, %v2954_v49  ;;  %vm1675_vm9 = vweird.f32 %v2954_v49 }
 0x32d   : > { %2793 = vmatmul.msk.f32.gmra.mxu0 %vm1249_vm5, %v1463_v13 }
 0x32e   : > { %v1672_v51 = vsub.f32 1.0, %v1671_v50 }
 0x34f   : > { %v1395_v15 = vpop.f32.mrf.mxu2 }
 0x350   : > { %1599 = vrot.lane.b32.xlu2 %v1395_v15, %s3012_s1 }
 0x357   : > { %v1398_v18 = vpop.f32.mrf.mxu2 }
 0x35b   : > { %v1493_v17 = vpop.f32.mrf.mxu0 }
 0x35c   : > { %1607 = vrot.lane.b32.xlu2 %v1493_v17, %s3013_s11 }
 0x364   : > { %1601 = vrot.lane.b32.xlu2 %v1398_v18, %s3012_s1 }
 0x381   : > { %v1591_v19 = vpop.f32.mrf.mxu2 }
 0x382   : > { %1615 = vrot.lane.b32.xlu0 %v1591_v19, %s3014_s27 }
 0x389   : > { %v1594_v24 = vpop.f32.mrf.mxu2 }
 0x3aa   : > { %v1496_v23 = vpop.f32.mrf.mxu0  ;;  %v1600_v26 = vpop.permute.xlu2 %1599 }
 0x3ab   : > { %1609 = vrot.lane.b32.xlu2 %v1496_v23, %s3013_s11  ;;  %v1621_v28 = vsel %vm1211_vm2, %v1295_v14, %v1600_v26 }
 0x3b3   : > { %1617 = vrot.lane.b32.xlu2 %v1594_v24, %s3014_s27  ;;  %v2913_v24 = vld [vmem:[%s3731_s18] ss:$0 sm:$0xff] }
 0x3b6   : > { %v1608_v27 = vpop.permute.xlu2 %1607 }
 0x3b7   : > { %v1623_v29 = vsel %vm1249_vm5, %v1621_v28, %v1608_v27 }
 0x3be   : > { %v1602_v33 = vpop.permute.xlu2 %1601 }
 0x3bf   : > { %v1622_v35 = vsel %vm1211_vm2, %v1298_v16, %v1602_v33 }
 0x3f4   : > { %v1616_v31 = vpop.permute.xlu0 %1615 }
 0x3f5   : > { %v1626_v32 = vsel %vm1625_vm8, %v1623_v29, %v1616_v31 }
 0x3f6   : > { %2800 = vmatmul.msk.f32.vlgmr.msrb.gmra.mxu3 %vm1129_vm1, %v1626_v32 }
 0x405   : > { %v1610_v34 = vpop.permute.xlu2 %1609 }
 0x406   : > { %v1624_v36 = vsel %vm1249_vm5, %v1622_v35, %v1610_v34 }
 0x40d   : > { %v1618_v37 = vpop.permute.xlu2 %1617 }
 0x40e   : > { %v1627_v38 = vsel %vm1625_vm8, %v1624_v36, %v1618_v37 }
 0x40f   : > { %2801 = vmatmul.msk.f32.gmra.mxu3 %vm1129_vm1, %v1627_v38 }
 0x479   : > { %v1654_v40 = vpop.f32.mrf.mxu3 }
 0x47a   : > { %v1655_v41 = vadd.f32 %v2911_v39, %v1654_v40 }
 0x47c   : > { %v1662_v42 = vadd.f32 %v1655_v41, %v3272_v10  ;;  %v1673_v10 = vmul.f32 %v2954_v49, %v1672_v51 }
 0x47e   : > { %v1664_v43 = vsel %vm1129_vm1, %v1662_v42, 0.0  ;;  %v1674_v52 = vadd.f32 %v2954_v49, %v1673_v10  ;;  %v1725_v10 = vld [vmem:[%s3732_s29] sm:$0xff] }
 0x47f   : > { %1665 = vadd.xlane.f32.xlu0 %v1664_v43  ;;  %vm1827_vm0 = vcmp.lt.f32.partialorder %v1725_v10, -0.5  ;;  %vm1825_vm3 = vcmp.gt.f32.partialorder %v1725_v10, 0.5 }
 0x480   : > { %v3402_v53 = vsel %vm1675_vm9, %v2954_v49, %v1674_v52  ;;  %v1738_v52 = vld [vmem:[%s3211_s9 + $0x18] sm:$0xff] }
 0x481   : > { %1814 = vmatpush.msra.mxu2 %v1738_v52 }
 0x492   : > { %v1657_v44 = vpop.f32.mrf.mxu3 }
 0x493   : > { %v1658_v45 = vadd.f32 %v2911_v39, %v1657_v44 }
 0x495   : > { %v1663_v46 = vadd.f32 %v1658_v45, %v3274_v11  ;;  %v1733_v11 = vld [vmem:[%s3206_s8 + $0x10] sm:$0xff] }
 0x496   : > { %1792 = vmatpush.msrb.mxu1 %v1733_v11 }
 0x497   : > { %v1667_v47 = vsel %vm1129_vm1, %v1663_v46, 0.0 }
 0x498   : > { %1668 = vadd.xlane.f32.xlu1 %v1667_v47  ;;  %1793 = vmatpush.msrb.mxu1 %v1732_v58 }
 0x49a   : > { %1794 = vmatpush.msrb.mxu1 %v1731_v60 }
 0x49b   : > { %2804 = vmatmul.msk.f32.vlgmr.msrb.gmra.mxu1 %vm1129_vm1, %v3412_v61 }
 0x4a3   : > { %2805 = vmatmul.msk.f32.gmra.mxu1 %vm1129_vm1, %v3420_v63 }
 0x4f2   : > { %v1666_v54 = vpop.xlane.xlu0 %1665 }
 0x4f3   : > { %v1677_v55 = vmul.f32 %v3402_v53, %v1666_v54  ;;  %v1737_v54 = vld [vmem:[%s3211_s9 + $0x10] sm:$0xff] }
 0x4f4   : > { %1815 = vmatpush.msra.mxu2 %v1737_v54 }
 0x4f5   : > { %v1679_v57 = vsub.f32 %v1662_v42, %v1677_v55  ;;  %v1736_v55 = vld [vmem:[%s3211_s9 + $0x8] sm:$0xff] }
 0x4f6   : > { %1816 = vmatpush.msra.mxu2 %v1736_v55 }
 0x4f7   : > { %v1681_v59 = vmul.f32 %v1679_v57, %v1679_v57 }
 0x4f8   : > { %1817 = vmatpush.msra.mxu2 %v1735_v56 }
 0x4f9   : > { %v1683_v62 = vsel %vm1129_vm1, %v1681_v59, 0.0  ;;  %2806 = vmatmul.msk.f32.vlgmr.msra.gmra.mxu2 %vm1129_vm1, %v3412_v61 }
 0x4fa   : > { %1684 = vadd.xlane.f32.xlu2 %v1683_v62 }
 0x501   : > { %2807 = vmatmul.msk.f32.gmra.mxu2 %vm1129_vm1, %v3420_v63 }
 0x50b   : > { %v1669_v0 = vpop.xlane.xlu1 %1668 }
 0x50c   : > { %v1678_v1 = vmul.f32 %v3402_v53, %v1669_v0 }
 0x50e   : > { %v1680_v2 = vsub.f32 %v1663_v46, %v1678_v1 }
 0x510   : > { %v1682_v3 = vmul.f32 %v1680_v2, %v1680_v2 }
 0x512   : > { %v1686_v4 = vsel %vm1129_vm1, %v1682_v3, 0.0 }
 0x513   : > { %1687 = vadd.xlane.f32.xlu1 %v1686_v4 }
 0x518   : > { %v1796_v22 = vpop.f32.mrf.mxu1 }
 0x519   : > { %1923 = vrot.lane.b32.xlu0 %v1796_v22, %s3008_s13 }
 0x520   : > { %v1799_v31 = vpop.f32.mrf.mxu1 }
 0x521   : > { %2808 = vmatpush.xpose.msk.msra.mxu3 %vm1211_vm2, %v1799_v31  ;;  %2023 = vrot.lane.b32.xlu0 %v1796_v22, %s3009_s3 }
 0x525   : > { %2809 = vmatpush.xpose.msk.msra.mxu3 %vm1211_vm2, %v1796_v22 }
 0x52c   : > { %1925 = vrot.lane.b32.xlu1 %v1799_v31, %s3008_s13 }
 0x534   : > { %2025 = vrot.lane.b32.xlu1 %v1799_v31, %s3009_s3 }
 0x56d   : > { %v1685_v9 = vpop.xlane.xlu2 %1684 }
 0x56e   : > { %v1689_v12 = vmul.f32 %v1685_v9, %v3402_v53 }
 0x570   : > { %v1691_v13 = vadd.f32 1e-05, %v1689_v12 }
 0x572   : > { %2955 = vrsqrt.f32 %v1691_v13  ;;  %vm1699_vm11 = vweird.f32 %v1691_v13 }
 0x578   : > { %v2956_v14 = vpop.eup %2955 }
 0x579   : > { %v1694_v15 = vmul.f32 %v2956_v14, %v1691_v13  ;;  %vm1700_vm10 = vweird.f32 %v2956_v14 }
 0x57a   : > { %vm1701_vm12 = vmor %vm1699_vm11, %vm1700_vm10  ;;  %vm2386_vm11 = vcmask 523264  }
 0x57b   : > { %v1695_v16 = vmul.f32 %v2956_v14, %v1694_v15 }
 0x57d   : > { %v1696_v17 = vmul.f32 0.5, %v1695_v16 }
 0x57f   : > { %v1697_v18 = vsub.f32 1.5, %v1696_v17 }
 0x581   : > { %v1698_v19 = vmul.f32 %v2956_v14, %v1697_v18 }
 0x583   : > { %v1702_v21 = vsel %vm1701_vm12, %v2956_v14, %v1698_v19 }
 0x584   : > { %v1713_v23 = vmul.f32 %v1702_v21, %v1679_v57  ;;  %v1829_v57 = vsel %vm1827_vm0, -inf, %v3011_v30 }
 0x586   : > { %v1718_v25 = vmul.f32 %v2912_v20, %v1713_v23  ;;  %v1688_v26 = vpop.xlane.xlu1 %1687 }
 0x587   : > { %v1690_v27 = vmul.f32 %v1688_v26, %v3402_v53 }
 0x588   : > { %v3443_v28 = vadd.f32 %v2913_v24, %v1718_v25 }
 0x589   : > { %v1692_v29 = vadd.f32 1e-05, %v1690_v27 }
 0x58a   : > { %2802 = vmatmul.msk.f32.vlgmr.msrb.gmra.mxu0 %vm1129_vm1, %v3443_v28 }
 0x58b   : > { %2957 = vrsqrt.f32 %v1692_v29  ;;  %vm1709_vm14 = vweird.f32 %v1692_v29  ;;  %v1924_v44 = vpop.permute.xlu0 %1923 }
 0x591   : > { %v2958_v32 = vpop.eup %2957 }
 0x592   : > { %v1704_v33 = vmul.f32 %v2958_v32, %v1692_v29  ;;  %vm1710_vm13 = vweird.f32 %v2958_v32 }
 0x593   : > { %vm1711_vm15 = vmor %vm1709_vm14, %vm1710_vm13  ;;  %v2024_v46 = vpop.permute.xlu0 %2023 }
 0x594   : > { %v1705_v34 = vmul.f32 %v2958_v32, %v1704_v33 }
 0x596   : > { %v1706_v35 = vmul.f32 0.5, %v1705_v34 }
 0x598   : > { %v1707_v36 = vsub.f32 1.5, %v1706_v35 }
 0x59a   : > { %v1708_v37 = vmul.f32 %v2958_v32, %v1707_v36 }
 0x59c   : > { %v1712_v38 = vsel %vm1711_vm15, %v2958_v32, %v1708_v37 }
 0x59d   : > { %v1714_v39 = vmul.f32 %v1712_v38, %v1680_v2  ;;  %v1726_v2 = vld [vmem:[%s3732_s29 + $0x8] sm:$0xff] }
 0x59e   : > { %v1926_v43 = vpop.permute.xlu1 %1925  ;;  %vm1828_vm4 = vcmp.lt.f32.partialorder %v1726_v2, -0.5  ;;  %vm1826_vm6 = vcmp.gt.f32.partialorder %v1726_v2, 0.5 }
 0x59f   : > { %v1719_v40 = vmul.f32 %v2912_v20, %v1714_v39  ;;  %2814 = vmatpush.xpose.msk.msra.mxu1 %vm1211_vm2, %v1926_v43  ;;  %v1830_v6 = vsel %vm1828_vm4, -inf, %v3011_v30 }
 0x5a1   : > { %v3452_v41 = vadd.f32 %v2913_v24, %v1719_v40 }
 0x5a3   : > { %2803 = vmatmul.msk.f32.gmra.mxu0 %vm1129_vm1, %v3452_v41  ;;  %2815 = vmatpush.xpose.msk.msra.mxu1 %vm1211_vm2, %v1924_v44 }
 0x5a6   : > { %v2026_v45 = vpop.permute.xlu1 %2025 }
 0x5a7   : > { %2820 = vmatpush.xpose.msk.msrb.mxu3 %vm1211_vm2, %v2026_v45 }
 0x5ab   : > { %2821 = vmatpush.xpose.msk.msrb.mxu3 %vm1211_vm2, %v2024_v46 }
 0x607   : > { %v1767_v42 = vpop.f32.mrf.mxu0 }
 0x608   : > { %2019 = vrot.lane.b32.xlu0 %v1767_v42, %s3009_s3  ;;  %1919 = vrot.lane.b32.xlu1 %v1767_v42, %s3008_s13 }
 0x609   : > { %2810 = vmatmul.msk.f32.vlgmr.msra.gmra.mxu3 %vm1211_vm2, %v1767_v42 }
 0x610   : > { %2123 = vrot.lane.b32.xlu1 %v1799_v31, %s3010_s25  ;;  %v1819_v31 = vpop.f32.mrf.mxu2 }
 0x618   : > { %2121 = vrot.lane.b32.xlu1 %v1796_v22, %s3010_s25  ;;  %v1822_v32 = vpop.f32.mrf.mxu2 }
 0x619   : > { %v2896_v33 = vpack.i.bf16 %v1819_v31, %v1822_v32  ;;  %1910 = vmatpush.msra.mxu0 %v1822_v32 }
 0x61b   : > { %1911 = vmatpush.msra.mxu0 %v1819_v31 }
 0x620   : > { %v1770_v47 = vpop.f32.mrf.mxu0 }
 0x621   : > { %2119 = vrot.lane.b32.xlu0 %v1770_v47, %s3010_s25  ;;  %2021 = vrot.lane.b32.xlu1 %v1770_v47, %s3009_s3 }
 0x622   : > { %1921 = vrot.lane.b32.xlu2 %v1770_v47, %s3008_s13  ;;  %2811 = vmatmul.msk.f32.gmra.mxu3 %vm1211_vm2, %v1770_v47 }
 0x62a   : > { %2117 = vrot.lane.b32.xlu2 %v1767_v42, %s3010_s25 }
 0x67a   : > { %v2020_v48 = vpop.permute.xlu0 %2019  ;;  %v1920_v49 = vpop.permute.xlu1 %1919 }
 0x67b   : > { %2816 = vmatmul.msk.f32.vlgmr.msra.gmra.mxu1 %vm1211_vm2, %v1920_v49  ;;  %2822 = vmatmul.msk.f32.vlgmr.msrb.gmra.mxu3 %vm1211_vm2, %v2020_v48 }
 0x67c   : > { %v1922_v50 = vpop.permute.xlu2 %1921 }
 0x682   : > { %v2124_v51 = vpop.permute.xlu1 %2123 }
 0x683   : > { %2817 = vmatmul.msk.f32.gmra.mxu1 %vm1211_vm2, %v1922_v50 }
 0x684   : > { %2826 = vmatpush.xpose.msk.msrb.mxu1 %vm1211_vm2, %v2124_v51  ;;  %v2118_v59 = vpop.permute.xlu2 %2117 }
 0x68a   : > { %v2122_v11 = vpop.permute.xlu1 %2121 }
 0x68b   : > { %2827 = vmatpush.xpose.msk.msrb.mxu1 %vm1211_vm2, %v2122_v11 }
 0x68c   : > { %v1860_v58 = vpop.f32.mrf.mxu3 }
 0x68d   : > { %v1866_v60 = vsel %vm1825_vm3, %v1860_v58, %v1829_v57 }
 0x68e   : > { %v1868_v62 = vsel %vm1249_vm5, %v1866_v60, -inf  ;;  %2828 = vmatmul.msk.f32.vlgmr.msrb.gmra.mxu1 %vm1211_vm2, %v2118_v59 }
 0x68f   : > { %1869 = vmax.xlane.f32.xlu1 %v1868_v62 }
 0x693   : > { %v2022_v0 = vpop.permute.xlu1 %2021  ;;  %v2120_v1 = vpop.permute.xlu0 %2119 }
 0x694   : > { %2823 = vmatmul.msk.f32.gmra.mxu3 %vm1211_vm2, %v2022_v0 }
 0x696   : > { %2829 = vmatmul.msk.f32.gmra.mxu1 %vm1211_vm2, %v2120_v1 }
 0x6a5   : > { %v1863_v5 = vpop.f32.mrf.mxu3 }
 0x6a6   : > { %v1867_v7 = vsel %vm1826_vm6, %v1863_v5, %v1830_v6 }
 0x6a7   : > { %v1871_v12 = vsel %vm1249_vm5, %v1867_v7, -inf }
 0x6f8   : > { %v1952_v3 = vpop.f32.mrf.mxu1 }
 0x6f9   : > { %v1958_v61 = vsel %vm1825_vm3, %v1952_v3, %v1829_v57 }
 0x6fa   : > { %v1960_v4 = vsel %vm1249_vm5, %v1958_v61, -inf }
 0x6fb   : > { %1961 = vmax.xlane.f32.xlu2 %v1960_v4 }
 0x6fe   : > { %v2052_v13 = vpop.f32.mrf.mxu3 }
 0x6ff   : > { %v2058_v14 = vsel %vm1825_vm3, %v2052_v13, %v1829_v57 }
 0x700   : > { %v1955_v63 = vpop.f32.mrf.mxu1  ;;  %v2060_v16 = vsel %vm1249_vm5, %v2058_v14, -inf }
 0x701   : > { %v1959_v8 = vsel %vm1826_vm6, %v1955_v63, %v1830_v6 }
 0x702   : > { %v1963_v9 = vsel %vm1249_vm5, %v1959_v8, -inf  ;;  %v1870_v15 = vpop.xlane.xlu1 %1869 }
 0x703   : > { %1964 = vmax.xlane.f32.xlu0 %v1963_v9  ;;  %1872 = vmax.xlane.f32.xlu2 %v1871_v12  ;;  %v1874_v30 = vsub.f32 %v1866_v60, %v1870_v15 }
 0x705   : > { %v1876_v20 = vmul.f32 1.442695, %v1874_v30 }
 0x707   : > { %2959 = vpow2.f32 %v1876_v20 }
 0x70b   : > { %v2150_v17 = vpop.f32.mrf.mxu1  ;;  %2061 = vmax.xlane.f32.xlu2 %v2060_v16 }
 0x70c   : > { %v2156_v18 = vsel %vm1825_vm3, %v2150_v17, %v1829_v57 }
 0x70d   : > { %v2158_v19 = vsel %vm1249_vm5, %v2156_v18, -inf  ;;  %v2960_v27 = vpop.eup %2959 }
 0x70e   : > { %2159 = vmax.xlane.f32.xlu1 %v2158_v19  ;;  %v1880_v29 = vsel %vm1249_vm5, %v2960_v27, 0.0 }
 0x713   : > { %v2153_v21 = vpop.f32.mrf.mxu1 }
 0x714   : > { %v2157_v22 = vsel %vm1826_vm6, %v2153_v21, %v1830_v6 }
 0x715   : > { %v2161_v23 = vsel %vm1249_vm5, %v2157_v22, -inf }
 0x716   : > { %2162 = vmax.xlane.f32.xlu0 %v2161_v23 }
 0x717   : > { %v2055_v24 = vpop.f32.mrf.mxu3 }
 0x718   : > { %v2059_v25 = vsel %vm1826_vm6, %v2055_v24, %v1830_v6 }
 0x719   : > { %v2063_v26 = vsel %vm1249_vm5, %v2059_v25, -inf }
 0x71a   : > { %2064 = vmax.xlane.f32.xlu1 %v2063_v26 }
 0x71e   : > { %1881 = vadd.xlane.f32.xlu0 %v1880_v29 }
 0x733   : > { %2897 = vrot.lane.b32.xlu1 %v2896_v33, %s3008_s13 }
 0x73b   : > { %2907 = vrot.lane.b32.xlu1 %v2896_v33, %s3009_s3  ;;  %s3733_s3 = scalar_lea.vmem %s3658_s15, %s3163_s7 }
 0x76e   : > { %v1962_v34 = vpop.xlane.xlu2 %1961 }
 0x76f   : > { %v1966_v35 = vsub.f32 %v1958_v61, %v1962_v34 }
 0x771   : > { %v1968_v36 = vmul.f32 1.442695, %v1966_v35 }
 0x773   : > { %2961 = vpow2.f32 %v1968_v36 }
 0x776   : > { %v1965_v37 = vpop.xlane.xlu0 %1964  ;;  %v1873_v38 = vpop.xlane.xlu2 %1872 }
 0x777   : > { %v1967_v39 = vsub.f32 %v1959_v8, %v1965_v37  ;;  %v1875_v40 = vsub.f32 %v1867_v7, %v1873_v38 }
 0x779   : > { %v2962_v42 = vpop.eup %2961  ;;  %v1970_v43 = vmul.f32 1.442695, %v1967_v39  ;;  %v1878_v44 = vmul.f32 1.442695, %v1875_v40 }
 0x77a   : > { %v1972_v45 = vsel %vm1249_vm5, %v2962_v42, 0.0 }
 0x77b   : > { %2963 = vpow2.f32 %v1970_v43  ;;  %1973 = vadd.xlane.f32.xlu2 %v1972_v45 }
 0x77c   : > { %2965 = vpow2.f32 %v1878_v44 }
 0x77e   : > { %v2062_v46 = vpop.xlane.xlu2 %2061 }
 0x77f   : > { %v2066_v47 = vsub.f32 %v2058_v14, %v2062_v46 }
 0x781   : > { %v2964_v48 = vpop.eup %2963  ;;  %v2068_v49 = vmul.f32 1.442695, %v2066_v47  ;;  %v2160_v50 = vpop.xlane.xlu1 %2159 }
 0x782   : > { %v2966_v51 = vpop.eup %2965  ;;  %v2164_v10 = vsub.f32 %v2156_v18, %v2160_v50  ;;  %v1975_v52 = vsel %vm1249_vm5, %v2964_v48, 0.0  ;;  %v1742_v50 = vld [vmem:[%s3216_s10 + $0x18] sm:$0xff] }
 0x783   : > { %2967 = vpow2.f32 %v2068_v49  ;;  %1976 = vadd.xlane.f32.xlu2 %v1975_v52  ;;  %v1883_v54 = vsel %vm1249_vm5, %v2966_v51, 0.0  ;;  %2266 = vmatpush.msra.mxu3 %v1742_v50  ;;  %v1739_v52 = vld [vmem:[%s3216_s10] sm:$0xff] }
 0x784   : > { %v2166_v55 = vmul.f32 1.442695, %v2164_v10  ;;  %1884 = vadd.xlane.f32.xlu0 %v1883_v54  ;;  %v1740_v10 = vld [vmem:[%s3216_s10 + $0x8] sm:$0xff] }
 0x786   : > { %2969 = vpow2.f32 %v2166_v55 }
 0x789   : > { %v2968_v56 = vpop.eup %2967  ;;  %v2163_v11 = vpop.xlane.xlu0 %2162 }
 0x78a   : > { %v2165_v57 = vsub.f32 %v2157_v22, %v2163_v11  ;;  %v2072_v58 = vsel %vm1249_vm5, %v2968_v56, 0.0 }
 0x78c   : > { %v2970_v59 = vpop.eup %2969  ;;  %v2168_v60 = vmul.f32 1.442695, %v2165_v57  ;;  %2073 = vadd.xlane.f32.xlu0 %v2072_v58 }
 0x78d   : > { %v2065_v62 = vpop.xlane.xlu1 %2064  ;;  %v2170_v0 = vsel %vm1249_vm5, %v2970_v59, 0.0 }
 0x78e   : > { %2971 = vpow2.f32 %v2168_v60  ;;  %v2067_v1 = vsub.f32 %v2059_v25, %v2065_v62  ;;  %2171 = vadd.xlane.f32.xlu2 %v2170_v0 }
 0x790   : > { %v2070_v2 = vmul.f32 1.442695, %v2067_v1 }
 0x791   : > { %v1882_v3 = vpop.xlane.xlu0 %1881 }
 0x792   : > { %2973 = vrcp.f32 %v1882_v3  ;;  %v2914_v3 = vld [vmem:[%s3733_s3] ss:$0 sm:$0xff] }
 0x793   : > { %2975 = vpow2.f32 %v2070_v2 }
 0x794   : > { %v2972_v61 = vpop.eup %2971 }
 0x795   : > { %v2173_v4 = vsel %vm1249_vm5, %v2972_v61, 0.0 }
 0x796   : > { %2174 = vadd.xlane.f32.xlu0 %v2173_v4 }
 0x798   : > { %v2974_v5 = vpop.eup %2973 }
 0x799   : > { %v2976_v6 = vpop.eup %2975  ;;  %v1888_v7 = vmul.f32 %v2974_v5, %v2960_v27 }
 0x79a   : > { %v2075_v63 = vsel %vm1249_vm5, %v2976_v6, 0.0 }
 0x79b   : > { %2812 = vmatmul.msk.f32.vlgmr.msra.gmra.mxu0 %vm1249_vm5, %v1888_v7 }
 0x79e   : > { %2076 = vadd.xlane.f32.xlu0 %v2075_v63 }
 0x7a5   : > { %v2898_v8 = vpop.permute.xlu1 %2897 }
 0x7a6   : > { %2902 = vrot.lane.b32.xlu2 %v2896_v33, %s3010_s25  ;;  %v2900_v9 = vunpack.i.h.bf16 %v2898_v8  ;;  %v2899_v12 = vunpack.i.l.bf16 %v2898_v8 }
 0x7a8   : > { %2010 = vmatpush.msrb.mxu2 %v2899_v12 }
 0x7aa   : > { %2011 = vmatpush.msrb.mxu2 %v2900_v9 }
 0x7ad   : > { %v2908_v13 = vpop.permute.xlu1 %2907 }
 0x7ae   : > { %v2909_v14 = vunpack.i.l.bf16 %v2908_v13  ;;  %v2910_v15 = vunpack.i.h.bf16 %v2908_v13 }
 0x7b0   : > { %2108 = vmatpush.msrb.mxu0 %v2909_v14 }
 0x7b2   : > { %2109 = vmatpush.msrb.mxu0 %v2910_v15 }
 0x7ee   : > { %v1974_v16 = vpop.xlane.xlu2 %1973 }
 0x7ef   : > { %2977 = vrcp.f32 %v1974_v16 }
 0x7f5   : > { %v2978_v17 = vpop.eup %2977 }
 0x7f6   : > { %v1980_v30 = vmul.f32 %v2978_v17, %v2962_v42  ;;  %v1977_v18 = vpop.xlane.xlu2 %1976 }
 0x7f7   : > { %v1885_v19 = vpop.xlane.xlu0 %1884  ;;  %2979 = vrcp.f32 %v1977_v18 }
 0x7f8   : > { %2981 = vrcp.f32 %v1885_v19  ;;  %2818 = vmatmul.msk.f32.vlgmr.msrb.gmra.mxu2 %vm1249_vm5, %v1980_v30  ;;  %v2338_v19 = vld [vmem:[%s3233_s12 + $0x18] sm:$0xff] }
 0x7f9   : > { %2361 = vmatpush.msra.mxu0 %v2338_v19 }
 0x7fd   : > { %v2980_v20 = vpop.eup %2979 }
 0x7fe   : > { %v2982_v21 = vpop.eup %2981  ;;  %v1981_v22 = vmul.f32 %v2980_v20, %v2964_v48  ;;  %v2337_v20 = vld [vmem:[%s3233_s12 + $0x10] sm:$0xff] }
 0x7ff   : > { %v2074_v23 = vpop.xlane.xlu0 %2073  ;;  %v1889_v24 = vmul.f32 %v2982_v21, %v2966_v51  ;;  %v1741_v51 = vld [vmem:[%s3216_s10 + $0x10] sm:$0xff]  ;;  %2362 = vmatpush.msra.mxu0 %v2337_v20  ;;  %v2336_v21 = vld [vmem:[%s3233_s12 + $0x8] sm:$0xff]  ;;  %s3737_s10 = sld [smem:[#allocation24_spill]] }
 0x800   : > { %2983 = vrcp.f32 %v2074_v23  ;;  %2819 = vmatmul.msk.f32.gmra.mxu2 %vm1249_vm5, %v1981_v22  ;;  %2267 = vmatpush.msra.mxu3 %v1741_v51  ;;  %v2335_v22 = vld [vmem:[%s3233_s12] sm:$0xff] }
 0x801   : > { %2813 = vmatmul.msk.f32.gmra.mxu0 %vm1249_vm5, %v1889_v24  ;;  %v2172_v25 = vpop.xlane.xlu2 %2171 }
 0x802   : > { %2985 = vrcp.f32 %v2172_v25  ;;  %2268 = vmatpush.msra.mxu3 %v1740_v10  ;;  %2363 = vmatpush.msra.mxu0 %v2336_v21 }
 0x804   : > { %2269 = vmatpush.msra.mxu3 %v1739_v52  ;;  %2364 = vmatpush.msra.mxu0 %v2335_v22 }
 0x805   : > { %s3738_s13 = scalar_lea.vmem %s3737_s10, %s3163_s7 }
 0x806   : > { %v2984_v26 = vpop.eup %2983 }
 0x807   : > { %v2080_v27 = vmul.f32 %v2984_v26, %v2968_v56  ;;  %v2381_v26 = vld [vmem:[%s3243_s23 + $0x38] sm:$0xff] }
 0x808   : > { %v2986_v32 = vpop.eup %2985  ;;  %2401 = vmatpush.msra.mxu1 %v2381_v26 }
 0x809   : > { %2824 = vmatmul.msk.f32.vlgmr.msrb.gmra.mxu0 %vm1249_vm5, %v2080_v27  ;;  %v2175_v29 = vpop.xlane.xlu0 %2174  ;;  %v2903_v31 = vpop.permute.xlu2 %2902  ;;  %v2178_v35 = vmul.f32 %v2986_v32, %v2970_v59  ;;  %v2380_v27 = vld [vmem:[%s3243_s23 + $0x30] sm:$0xff] }
 0x80a   : > { %v2904_v33 = vunpack.i.l.bf16 %v2903_v31  ;;  %2987 = vrcp.f32 %v2175_v29  ;;  %v2905_v34 = vunpack.i.h.bf16 %v2903_v31  ;;  %v2379_v29 = vld [vmem:[%s3243_s23 + $0x28] sm:$0xff]  ;;  %2402 = vmatpush.msra.mxu1 %v2380_v27 }
 0x80c   : > { %2206 = vmatpush.msra.mxu2 %v2904_v33  ;;  %v2378_v33 = vld [vmem:[%s3243_s23 + $0x20] sm:$0xff]  ;;  %2403 = vmatpush.msra.mxu1 %v2379_v29 }
 0x80e   : > { %2207 = vmatpush.msra.mxu2 %v2905_v34  ;;  %2404 = vmatpush.msra.mxu1 %v2378_v33 }
 0x80f   : > { %2830 = vmatmul.msk.f32.vlgmr.msra.gmra.mxu2 %vm1249_vm5, %v2178_v35 }
 0x810   : > { %v2988_v37 = vpop.eup %2987 }
 0x811   : > { %v2077_v36 = vpop.xlane.xlu0 %2076  ;;  %v2179_v38 = vmul.f32 %v2988_v37, %v2972_v61  ;;  %v2377_v37 = vld [vmem:[%s3243_s23 + $0x18] sm:$0xff] }
 0x812   : > { %2989 = vrcp.f32 %v2077_v36  ;;  %2405 = vmatpush.msra.mxu1 %v2377_v37  ;;  %v2919_v37 = vld [vmem:[%s1093_s4] ss:$0 sm:$0xff] }
 0x817   : > { %2831 = vmatmul.msk.f32.gmra.mxu2 %vm1249_vm5, %v2179_v38 }
 0x818   : > { %v2990_v39 = vpop.eup %2989  ;;  %v1913_v42 = vpop.f32.mrf.mxu0 }
 0x819   : > { %v2081_v40 = vmul.f32 %v2990_v39, %v2976_v6 }
 0x81b   : > { %2825 = vmatmul.msk.f32.gmra.mxu0 %vm1249_vm5, %v2081_v40 }
 0x87b   : > { %v2013_v43 = vpop.f32.mrf.mxu2 }
 0x87c   : > { %2217 = vrot.lane.b32.xlu1 %v2013_v43, %s3012_s1 }
 0x87e   : > { %v1916_v44 = vpop.f32.mrf.mxu0 }
 0x883   : > { %v2016_v45 = vpop.f32.mrf.mxu2 }
 0x884   : > { %2219 = vrot.lane.b32.xlu2 %v2016_v45, %s3012_s1  ;;  %s3734_s1 = scalar_lea.vmem %s3659_s16, %s3163_s7  ;;  %s3739_s7 = sld [smem:[#allocation4_spill]] }
 0x886   : > { %v2111_v46 = vpop.f32.mrf.mxu0 }
 0x887   : > { %2225 = vrot.lane.b32.xlu0 %v2111_v46, %s3013_s11 }
 0x88a   : > { %p2838_p5 = scmp.ne.s32.totalorder %s3739_s7, 1 }
 0x88b   : > { %s3740_s12 = sld [smem:[#allocation25_spill]] (!%p2838_p5) }
 0x88c   : > { %s3741_s18 = sld [smem:[#allocation26_spill]] (!%p2838_p5) }
 0x892   : > { %v2209_v47 = vpop.f32.mrf.mxu2 }
 0x893   : > { %2233 = vrot.lane.b32.xlu1 %v2209_v47, %s3014_s27 }
 0x898   : > { %v2114_v48 = vpop.f32.mrf.mxu0 }
 0x89a   : > { %v2212_v49 = vpop.f32.mrf.mxu2 }
 0x89b   : > { %2227 = vrot.lane.b32.xlu1 %v2114_v48, %s3013_s11  ;;  %2235 = vrot.lane.b32.xlu2 %v2212_v49, %s3014_s27  ;;  %v2916_v49 = vld [vmem:[%s3735_s14] ss:$0 sm:$0xff] }
 0x8de   : > { %v2220_v58 = vpop.permute.xlu2 %2219 }
 0x8df   : > { %v2240_v60 = vsel %vm1211_vm2, %v1916_v44, %v2220_v58  ;;  %v2915_v44 = vld [vmem:[%s3734_s1] ss:$0 sm:$0xff]  ;;  %v2376_v58 = vld [vmem:[%s3243_s23 + $0x10] sm:$0xff] }
 0x8e0   : > { %2406 = vmatpush.msra.mxu1 %v2376_v58 }
 0x8ee   : > { %v2218_v54 = vpop.permute.xlu1 %2217 }
 0x8ef   : > { %v2239_v56 = vsel %vm1211_vm2, %v1913_v42, %v2218_v54 }
 0x8f5   : > { %v2236_v0 = vpop.permute.xlu2 %2235 }
 0x8f9   : > { %v2226_v55 = vpop.permute.xlu0 %2225 }
 0x8fa   : > { %v2241_v11 = vsel %vm1249_vm5, %v2239_v56, %v2226_v55 }
 0x905   : > { %v2234_v57 = vpop.permute.xlu1 %2233 }
 0x906   : > { %v2243_v59 = vsel %vm1625_vm8, %v2241_v11, %v2234_v57 }
 0x907   : > { %2832 = vmatmul.msk.f32.vlgmr.msra.gmra.mxu3 %vm1129_vm1, %v2243_v59  ;;  %v2375_v59 = vld [vmem:[%s3243_s23 + $0x8] sm:$0xff] }
 0x908   : > { %2407 = vmatpush.msra.mxu1 %v2375_v59 }
 0x90d   : > { %v2228_v62 = vpop.permute.xlu1 %2227 }
 0x90e   : > { %v2242_v1 = vsel %vm1249_vm5, %v2240_v60, %v2228_v62  ;;  %v2374_v60 = vld [vmem:[%s3243_s23] sm:$0xff] }
 0x90f   : > { %v2244_v2 = vsel %vm1625_vm8, %v2242_v1, %v2236_v0  ;;  %2408 = vmatpush.msra.mxu1 %v2374_v60  ;;  %v2917_v62 = vld [vmem:[%s3736_s28] ss:$0 sm:$0xff] }
 0x910   : > { %2833 = vmatmul.msk.f32.gmra.mxu3 %vm1129_vm1, %v2244_v2 }
 0x98a   : > { %v2271_v61 = vpop.f32.mrf.mxu3 }
 0x98b   : > { %v2272_v4 = vadd.f32 %v2914_v3, %v2271_v61 }
 0x98d   : > { %v2279_v5 = vadd.f32 %v2272_v4, %v3443_v28 }
 0x98f   : > { %v2281_v6 = vsel %vm1129_vm1, %v2279_v5, 0.0 }
 0x990   : > { %2282 = vadd.xlane.f32.xlu0 %v2281_v6 }
 0x993   : > { %v2274_v7 = vpop.f32.mrf.mxu3 }
 0x994   : > { %v2275_v63 = vadd.f32 %v2914_v3, %v2274_v7 }
 0x996   : > { %v2280_v8 = vadd.f32 %v2275_v63, %v3452_v41 }
 0x998   : > { %v2284_v9 = vsel %vm1129_vm1, %v2280_v8, 0.0 }
 0x999   : > { %2285 = vadd.xlane.f32.xlu1 %v2284_v9 }
 0xa03   : > { %v2283_v12 = vpop.xlane.xlu0 %2282 }
 0xa04   : > { %v2287_v13 = vmul.f32 %v2283_v12, %v3402_v53 }
 0xa06   : > { %v2289_v14 = vsub.f32 %v2279_v5, %v2287_v13  ;;  %v2918_v5 = vld [vmem:[%s1090_s5] ss:$0 sm:$0xff]  ;;  %s3742_s5 = sld [smem:[#allocation27_spill]] (!%p2838_p5) }
 0xa08   : > { %v2291_v15 = vmul.f32 %v2289_v14, %v2289_v14 }
 0xa0a   : > { %v2293_v28 = vsel %vm1129_vm1, %v2291_v15, 0.0 }
 0xa0b   : > { %2294 = vadd.xlane.f32.xlu2 %v2293_v28 }
 0xa0c   : > { %v2286_v16 = vpop.xlane.xlu1 %2285 }
 0xa0d   : > { %v2288_v17 = vmul.f32 %v2286_v16, %v3402_v53 }
 0xa0f   : > { %v2290_v30 = vsub.f32 %v2280_v8, %v2288_v17 }
 0xa11   : > { %v2292_v41 = vmul.f32 %v2290_v30, %v2290_v30 }
 0xa13   : > { %v2296_v18 = vsel %vm1129_vm1, %v2292_v41, 0.0 }
 0xa14   : > { %2297 = vadd.xlane.f32.xlu0 %v2296_v18 }
 0xa7e   : > { %v2295_v23 = vpop.xlane.xlu2 %2294 }
 0xa7f   : > { %v2299_v24 = vmul.f32 %v2295_v23, %v3402_v53 }
 0xa81   : > { %v2301_v25 = vadd.f32 1e-05, %v2299_v24 }
 0xa83   : > { %2991 = vrsqrt.f32 %v2301_v25  ;;  %vm2309_vm5 = vweird.f32 %v2301_v25 }
 0xa87   : > { %v2298_v31 = vpop.xlane.xlu0 %2297 }
 0xa88   : > { %v2300_v32 = vmul.f32 %v2298_v31, %v3402_v53 }
 0xa89   : > { %v2992_v34 = vpop.eup %2991 }
 0xa8a   : > { %v2304_v35 = vmul.f32 %v2992_v34, %v2301_v25  ;;  %v2302_v36 = vadd.f32 1e-05, %v2300_v32  ;;  %vm2310_vm2 = vweird.f32 %v2992_v34 }
 0xa8b   : > { %vm2311_vm7 = vmor %vm2309_vm5, %vm2310_vm2 }
 0xa8c   : > { %v2305_v38 = vmul.f32 %v2992_v34, %v2304_v35  ;;  %2993 = vrsqrt.f32 %v2302_v36  ;;  %vm2319_vm9 = vweird.f32 %v2302_v36 }
 0xa8e   : > { %v2306_v39 = vmul.f32 0.5, %v2305_v38 }
 0xa90   : > { %v2307_v40 = vsub.f32 1.5, %v2306_v39  ;;  %v2920_v39 = vld [vmem:[%s3738_s13] ss:$0 sm:$0xff] }
 0xa92   : > { %v2994_v42 = vpop.eup %2993  ;;  %v2308_v43 = vmul.f32 %v2992_v34, %v2307_v40 }
 0xa93   : > { %v2314_v45 = vmul.f32 %v2994_v42, %v2302_v36  ;;  %vm2320_vm8 = vweird.f32 %v2994_v42 }
 0xa94   : > { %v2312_v46 = vsel %vm2311_vm7, %v2992_v34, %v2308_v43  ;;  %vm2321_vm10 = vmor %vm2319_vm9, %vm2320_vm8 }
 0xa95   : > { %v2323_v47 = vmul.f32 %v2312_v46, %v2289_v14  ;;  %v2315_v48 = vmul.f32 %v2994_v42, %v2314_v45 }
 0xa97   : > { %v2328_v50 = vmul.f32 %v2915_v44, %v2323_v47  ;;  %v2316_v51 = vmul.f32 0.5, %v2315_v48 }
 0xa99   : > { %v2317_v10 = vsub.f32 1.5, %v2316_v51  ;;  %v2333_v52 = vadd.f32 %v2916_v49, %v2328_v50 }
 0xa9b   : > { %v2318_v54 = vmul.f32 %v2994_v42, %v2317_v10  ;;  %2834 = vmatmul.msk.f32.vlgmr.msra.gmra.mxu0 %vm1129_vm1, %v2333_v52 }
 0xa9d   : > { %v2322_v55 = vsel %vm2321_vm10, %v2994_v42, %v2318_v54 }
 0xa9e   : > { %v2324_v56 = vmul.f32 %v2322_v55, %v2290_v30 }
 0xaa0   : > { %v2329_v11 = vmul.f32 %v2915_v44, %v2324_v56 }
 0xaa2   : > { %v2334_v57 = vadd.f32 %v2916_v49, %v2329_v11 }
 0xaa4   : > { %2835 = vmatmul.msk.f32.gmra.mxu0 %vm1129_vm1, %v2334_v57 }
 0xb18   : > { %v2366_v0 = vpop.f32.mrf.mxu0 }
 0xb19   : > { %v2367_v1 = vadd.f32 %v2917_v62, %v2366_v0 }
 0xb1b   : > { %v2372_v2 = vmax.f32 %v2367_v1, 0.0 }
 0xb1d   : > { %2836 = vmatmul.msk.f32.vlgmr.msra.gmra.mxu1 %vm2386_vm11, %v2372_v2 }
 0xb21   : > { %v2369_v3 = vpop.f32.mrf.mxu0 }
 0xb22   : > { %v2370_v61 = vadd.f32 %v2917_v62, %v2369_v3 }
 0xb24   : > { %v2373_v4 = vmax.f32 %v2370_v61, 0.0 }
 0xb26   : > { %2837 = vmatmul.msk.f32.gmra.mxu1 %vm2386_vm11, %v2373_v4 }
 0xb9a   : > { %v2410_v6 = vpop.f32.mrf.mxu1 }
 0xb9b   : > { %v2411_v7 = vadd.f32 %v2918_v5, %v2410_v6 }
 0xb9d   : > { %v2418_v63 = vadd.f32 %v2411_v7, %v2333_v52 }
 0xb9f   : > { %v2420_v8 = vsel %vm1129_vm1, %v2418_v63, 0.0 }
 0xba0   : > { %2421 = vadd.xlane.f32.xlu1 %v2420_v8 }
 0xba3   : > { %v2413_v9 = vpop.f32.mrf.mxu1 }
 0xba4   : > { %v2414_v12 = vadd.f32 %v2918_v5, %v2413_v9 }
 0xba6   : > { %v2419_v13 = vadd.f32 %v2414_v12, %v2334_v57 }
 0xba8   : > { %v2423_v14 = vsel %vm1129_vm1, %v2419_v13, 0.0 }
 0xba9   : > { %2424 = vadd.xlane.f32.xlu2 %v2423_v14 }
 0xc13   : > { %v2422_v15 = vpop.xlane.xlu1 %2421 }
 0xc14   : > { %v2426_v28 = vmul.f32 %v2422_v15, %v3402_v53 }
 0xc16   : > { %v2428_v16 = vsub.f32 %v2418_v63, %v2426_v28 }
 0xc18   : > { %v2430_v17 = vmul.f32 %v2428_v16, %v2428_v16 }
 0xc1a   : > { %v2432_v30 = vsel %vm1129_vm1, %v2430_v17, 0.0 }
 0xc1b   : > { %2433 = vadd.xlane.f32.xlu0 %v2432_v30 }
 0xc1c   : > { %v2425_v41 = vpop.xlane.xlu2 %2424 }
 0xc1d   : > { %v2427_v18 = vmul.f32 %v2425_v41, %v3402_v53 }
 0xc1f   : > { %v2429_v19 = vsub.f32 %v2419_v13, %v2427_v18 }
 0xc21   : > { %v2431_v20 = vmul.f32 %v2429_v19, %v2429_v19 }
 0xc23   : > { %v2435_v21 = vsel %vm1129_vm1, %v2431_v20, 0.0 }
 0xc24   : > { %2436 = vadd.xlane.f32.xlu1 %v2435_v21 }
 0xc8e   : > { %v2434_v22 = vpop.xlane.xlu0 %2433 }
 0xc8f   : > { %v2438_v23 = vmul.f32 %v2434_v22, %v3402_v53 }
 0xc91   : > { %v2440_v24 = vadd.f32 1e-05, %v2438_v23 }
 0xc93   : > { %2995 = vrsqrt.f32 %v2440_v24  ;;  %vm2448_vm13 = vweird.f32 %v2440_v24 }
 0xc97   : > { %v2437_v25 = vpop.xlane.xlu1 %2436 }
 0xc98   : > { %v2439_v26 = vmul.f32 %v2437_v25, %v3402_v53 }
 0xc99   : > { %v2996_v27 = vpop.eup %2995 }
 0xc9a   : > { %v2443_v29 = vmul.f32 %v2996_v27, %v2440_v24  ;;  %v2441_v31 = vadd.f32 1e-05, %v2439_v26  ;;  %vm2449_vm12 = vweird.f32 %v2996_v27 }
 0xc9b   : > { %vm2450_vm14 = vmor %vm2448_vm13, %vm2449_vm12 }
 0xc9c   : > { %v2444_v32 = vmul.f32 %v2996_v27, %v2443_v29  ;;  %2997 = vrsqrt.f32 %v2441_v31  ;;  %vm2458_vm0 = vweird.f32 %v2441_v31 }
 0xc9e   : > { %v2445_v33 = vmul.f32 0.5, %v2444_v32 }
 0xca0   : > { %v2446_v34 = vsub.f32 1.5, %v2445_v33 }
 0xca2   : > { %v2998_v35 = vpop.eup %2997  ;;  %v2447_v36 = vmul.f32 %v2996_v27, %v2446_v34 }
 0xca3   : > { %v2453_v38 = vmul.f32 %v2998_v35, %v2441_v31  ;;  %vm2459_vm15 = vweird.f32 %v2998_v35 }
 0xca4   : > { %v2451_v53 = vsel %vm2450_vm14, %v2996_v27, %v2447_v36  ;;  %vm2460_vm3 = vmor %vm2458_vm0, %vm2459_vm15 }
 0xca5   : > { %v2462_v40 = vmul.f32 %v2451_v53, %v2428_v16  ;;  %v2454_v42 = vmul.f32 %v2998_v35, %v2453_v38 }
 0xca7   : > { %v2467_v43 = vmul.f32 %v2919_v37, %v2462_v40  ;;  %v2455_v44 = vmul.f32 0.5, %v2454_v42 }
 0xca9   : > { %v2472_v45 = vadd.f32 %v2920_v39, %v2467_v43  ;;  %v2456_v46 = vsub.f32 1.5, %v2455_v44 }
 0xcab   : > { %2474 = vst.msk [vmem:[#allocation2] sm:$0xff] %vm1129_vm1, %v2472_v45  ;;  %v2457_v47 = vmul.f32 %v2998_v35, %v2456_v46 }
 0xcad   : > { %v2461_v48 = vsel %vm2460_vm3, %v2998_v35, %v2457_v47 }
 0xcae   : > { %v2463_v49 = vmul.f32 %v2461_v48, %v2429_v19 }
 0xcb0   : > { %v2468_v50 = vmul.f32 %v2919_v37, %v2463_v49  ;;  %2479 = sbr.rel (%p2838_p5) target bundleno = 3391 (0xd3f), region = 132 }
 0xcb2   : > { %v2473_v51 = vadd.f32 %v2920_v39, %v2468_v50 }
 0xcb4   : > { %2475 = vst.msk [vmem:[#allocation2 + $0x8] sm:$0xff] %vm1129_vm1, %v2473_v51 }
 0xcb5   : > { %v2483_v10 = vld [vmem:[%s3740_s12 + $0x18] sm:$0xff]  ;;  %v2482_v52 = vld [vmem:[%s3740_s12 + $0x10] sm:$0xff]  ;;  %v2481_v54 = vld [vmem:[%s3740_s12 + $0x8] sm:$0xff] }
 0xcb6   : > { %2506 = vmatpush.msra.mxu0 %v2483_v10  ;;  %2861 = vmatpush.msra.mxu1 %v2483_v10  ;;  %v2480_v55 = vld [vmem:[%s3740_s12] sm:$0xff] }
 0xcb7   : > { %v2999_v56 = vld [vmem:[%s3741_s18] ss:$0 sm:$0xff] }
 0xcb8   : > { %2507 = vmatpush.msra.mxu0 %v2482_v52  ;;  %2862 = vmatpush.msra.mxu1 %v2482_v52 }
 0xcba   : > { %2508 = vmatpush.msra.mxu0 %v2481_v54  ;;  %2863 = vmatpush.msra.mxu1 %v2481_v54 }
 0xcbc   : > { %2509 = vmatpush.msra.mxu0 %v2480_v55  ;;  %2864 = vmatpush.msra.mxu1 %v2480_v55 }
 0xcbd   : > { %2839 = vmatmul.msk.f32.vlgmr.msra.gmra.mxu0 %vm1129_vm1, %v2472_v45  ;;  %2840 = vmatmul.msk.f32.vlgmr.msra.gmra.mxu1 %vm1129_vm1, %v2473_v51 }
 0xd3a   : > { %v2511_v11 = vpop.f32.mrf.mxu0  ;;  %v2514_v57 = vpop.f32.mrf.mxu1 }
 0xd3b   : > { %v2512_v58 = vadd.f32 %v2999_v56, %v2511_v11  ;;  %v2515_v59 = vadd.f32 %v2999_v56, %v2514_v57 }
 0xd3d   : > { %2517 = vst [vmem:[%s3742_s5] sm:$0xff] %v2512_v58 }
 0xd3e   : > { %2518 = vst [vmem:[%s3742_s5 + $0x8] sm:$0xff] %v2515_v59 }
 0xd3f PF: > { %s3743_s10 = sld [smem:[#allocation3_spill]] }
 0xd45   : > { %s36_s27 = sadd.s32 1, %s3743_s10  }
 0xd46   : > { %p33_p6 = scmp.ge.s32.totalorder %s36_s27, 4  }
 0xd48   :  { %35 = sbr.rel (!%p33_p6) target bundleno = 21 (0x15), region = 215 }

</bundles_post_ra>
